<compile_context>
chip_gen: v7x
topology: tpu7x:2x2x1
jax: 0.10.0
libtpu: 0.0.40
codegen_flags: <defaults>
</compile_context>

<pallas_src>
import functools

import jax
import jax.numpy as jnp
import numpy as np
from jax.experimental import pallas as pl
from jax.experimental.pallas import tpu as pltpu

EMBED_DIM = 8
NUM_HEADS = 2
NUM_LAYERS = 2
FFN_DIM = 2048      # PyTorch TransformerEncoderLayer default dim_feedforward
EPS = 1e-5          # PyTorch LayerNorm / layer_norm_eps default
HIGHEST = jax.lax.Precision.HIGHEST   # used by the f32 reference only
# TODO(synk): dropout(p=0.1) has no effect at inference; implemented as identity.


def _layernorm(x, g, b):
    mu = jnp.mean(x, axis=-1, keepdims=True)
    var = jnp.mean((x - mu) ** 2, axis=-1, keepdims=True)
    return (x - mu) * jax.lax.rsqrt(var + EPS) * g + b


def _tab_transformer_layer_kernel(x_ref, neg_ref, wattn_ref, wff_ref, vecs_ref,
                                  fin_ref, out_ref, x_acc):
    """One transformer encoder layer per grid step; tokens live in x_acc."""
    l = pl.program_id(0)
    N, E = x_ref.shape              # N = B * S tokens, sequence-major
    B = out_ref.shape[0]
    H = NUM_HEADS
    dh = E // H
    bf16 = jnp.bfloat16

    # bf16 MXU passes with f32 accumulation everywhere.
    dot = functools.partial(jnp.einsum, preferred_element_type=jnp.float32)

    @pl.when(l == 0)
    def _():
        x_acc[...] = x_ref[...]

    x = x_acc[...]                  # (N, E) f32, resident across layers
    neg = neg_ref[...]              # (N, N): +1e30 on cross-sequence pairs, else 0

    # ---- unpack this layer's weights (bf16) and small vectors (f32) ----
    wqkv = wattn_ref[0:E, :]                 # (E, 3E); Q cols pre-scaled by 1/sqrt(dh)
    woT = wattn_ref[E:2 * E, 0:E]            # (E, E)
    w1T = wff_ref[0:E, :]                    # (E, F) lane-dense
    w2d = wff_ref[E:2 * E, :]                # (E, F) lane-dense (contracted on F)
    b1 = wff_ref[2 * E:2 * E + 1, :].astype(jnp.float32)   # (1, F)
    bqkv = vecs_ref[0:1, :]                  # (1, 3E); Q part pre-scaled
    bo = vecs_ref[1:2, 0:E]
    b2 = vecs_ref[2:3, 0:E]
    g1 = vecs_ref[3:4, 0:E]
    be1 = vecs_ref[4:5, 0:E]
    g2 = vecs_ref[5:6, 0:E]
    be2 = vecs_ref[6:7, 0:E]

    # ---- multi-head self-attention (post-LN, dropout = identity) ----
    # One fused QKV GEMM for every token of every batch.
    qkv = dot('ne,ef->nf', x.astype(bf16), wqkv) + bqkv          # (N, 3E) f32
    heads = []
    for h in range(H):
        lo = h * dh
        qh = qkv[:, lo:lo + dh]                                  # (N, dh)
        kh = qkv[:, E + lo:E + lo + dh]
        vh = qkv[:, 2 * E + lo:2 * E + lo + dh]
        # Scores for all sequences in one (N, N) matmul.  The additive -1e30
        # bias (kept on the f32 path, applied before the row max) makes
        # cross-sequence probabilities exactly zero after exp.
        s = dot('qd,kd->qk', qh, kh) - neg
        s = s - jnp.max(s, axis=-1, keepdims=True)
        p = jnp.exp(s)
        p = p * pl.reciprocal(jnp.sum(p, axis=-1, keepdims=True), approx=True)
        heads.append(dot('qk,kd->qd', p, vh))                    # (N, dh)
    # Merge heads and run a single output-projection GEMM.
    o_cat = jnp.concatenate(heads, axis=-1)                      # (N, E)
    attn = dot('ne,ef->nf', o_cat.astype(bf16), woT) + bo
    x = _layernorm(x + attn, g1, be1)

    # ---- feed-forward (Linear -> ReLU -> Linear), all batches at once ----
    h1 = jnp.maximum(dot('ne,ef->nf', x.astype(bf16), w1T) + b1, 0.0)   # (N, F)
    ff = dot('nf,ef->ne', h1.astype(bf16), w2d) + b2                    # (N, E)
    x = _layernorm(x + ff, g2, be2)

    x_acc[...] = x

    @pl.when(l == pl.num_programs(0) - 1)
    def _():
        # Sequence-major layout => CLS tokens are rows 0..B-1.  Single store.
        out_ref[...] = _layernorm(x[0:B, :], fin_ref[0:1, :], fin_ref[1:2, :])


def tab_transformer_forward(cat_inputs, params, packed):
    # --- embedding lookup + CLS prepend (glue, plain JAX) ---
    embeds = [tab[cat_inputs[:, i]] for i, tab in enumerate(params['emb'])]
    x = jnp.stack(embeds, axis=1)                                  # (B, nfeat, E)
    B = x.shape[0]
    cls = jnp.broadcast_to(params['cls_token'], (B, 1, EMBED_DIM))
    x = jnp.concatenate([cls, x], axis=1).astype(jnp.float32)      # (B, S, E)
    S = x.shape[1]
    N = B * S
    E, F, L = EMBED_DIM, FFN_DIM, NUM_LAYERS

    # Sequence-major flatten: token (s, b) -> row s*B + b (CLS rows first).
    x_flat = jnp.transpose(x, (1, 0, 2)).reshape(N, E)

    # Additive "-inf" bias for cross-sequence pairs (row i is batch i % B).
    r = np.arange(N)
    neg = jnp.asarray(
        np.where((r[:, None] % B) == (r[None, :] % B), 0.0, 1e30), jnp.float32)

    grid_spec = pltpu.PrefetchScalarGridSpec(
        num_scalar_prefetch=0,
        grid=(L,),
        in_specs=[
            pl.BlockSpec((N, E), lambda l: (0, 0)),                    # tokens (fetched once)
            pl.BlockSpec((N, N), lambda l: (0, 0)),                    # mask   (fetched once)
            pl.BlockSpec((None, 2 * E, 3 * E), lambda l: (l, 0, 0)),   # QKV + out-proj weights
            pl.BlockSpec((None, 2 * E + 1, F), lambda l: (l, 0, 0)),   # w1 / w2 / b1
            pl.BlockSpec((None, 8, 3 * E), lambda l: (l, 0, 0)),       # per-layer biases/gains
            pl.BlockSpec((2, E), lambda l: (0, 0)),                    # final LN params
        ],
        out_specs=pl.BlockSpec((B, E), lambda l: (0, 0)),
        scratch_shapes=[pltpu.VMEM((N, E), jnp.float32)],              # resident tokens
    )
    return pl.pallas_call(
        _tab_transformer_layer_kernel,
        out_shape=jax.ShapeDtypeStruct((B, E), jnp.float32),
        grid_spec=grid_spec,
        compiler_params=pltpu.CompilerParams(dimension_semantics=("arbitrary",)),
    )(x_flat, neg, packed['wattn'], packed['wff'], packed['vecs'], packed['fin'])


def init_params(key, num_categories_list):
    """Logical f32 parameters (also consumed by the pure-JAX reference)."""
    ks = iter(jax.random.split(key, 64))

    def nrm(shape, scale=0.1):
        return (scale * jax.random.normal(next(ks), shape)).astype(jnp.float32)

    E, L, F = EMBED_DIM, NUM_LAYERS, FFN_DIM
    return dict(
        emb=[nrm((n, E), 1.0) for n in num_categories_list],
        cls_token=jnp.zeros((1, 1, E), jnp.float32),          # nn.Parameter(zeros)
        # All weights stored so y = x @ W (in_features x out_features), except
        # w2d which is lane-dense (out x in = E x F) and contracted on F.
        wqkv=nrm((L, E, 3 * E)), bqkv=nrm((L, 1, 3 * E), 0.02),
        woT=nrm((L, E, E)), bo=nrm((L, 1, E), 0.02),
        w1T=nrm((L, E, F)), b1=nrm((L, 1, F), 0.02),
        w2d=nrm((L, E, F), 0.02), b2=nrm((L, 1, E), 0.02),
        g1=jnp.ones((L, 1, E), jnp.float32), be1=jnp.zeros((L, 1, E), jnp.float32),
        g2=jnp.ones((L, 1, E), jnp.float32), be2=jnp.zeros((L, 1, E), jnp.float32),
        gf=jnp.ones((1, E), jnp.float32), bf=jnp.zeros((1, E), jnp.float32),
    )


def pack_params(p):
    """Pack / pre-scale / cast parameters into the kernel's consolidated layout."""
    E, L, F, H = EMBED_DIM, NUM_LAYERS, FFN_DIM, NUM_HEADS
    dh = E // H
    scale = 1.0 / (dh ** 0.5)
    # Fold the softmax 1/sqrt(dh) into the Q weights AND Q bias host-side.
    wqkv = p['wqkv'].at[:, :, :E].multiply(scale)
    bqkv = p['bqkv'].at[:, :, :E].multiply(scale)

    wattn = jnp.zeros((L, 2 * E, 3 * E), jnp.float32)
    wattn = wattn.at[:, :E, :].set(wqkv)              # rows 0:E  -> QKV weights
    wattn = wattn.at[:, E:, :E].set(p['woT'])         # rows E:2E -> out-proj

    wff = jnp.zeros((L, 2 * E + 1, F), jnp.float32)
    wff = wff.at[:, :E, :].set(p['w1T'])              # rows 0:E  -> w1 (E,F)
    wff = wff.at[:, E:2 * E, :].set(p['w2d'])         # rows E:2E -> w2 lane-dense (E,F)
    wff = wff.at[:, 2 * E, :].set(p['b1'][:, 0, :])   # row 2E    -> b1

    vecs = jnp.zeros((L, 8, 3 * E), jnp.float32)
    vecs = vecs.at[:, 0, :].set(bqkv[:, 0, :])
    vecs = vecs.at[:, 1, :E].set(p['bo'][:, 0, :])
    vecs = vecs.at[:, 2, :E].set(p['b2'][:, 0, :])
    vecs = vecs.at[:, 3, :E].set(p['g1'][:, 0, :])
    vecs = vecs.at[:, 4, :E].set(p['be1'][:, 0, :])
    vecs = vecs.at[:, 5, :E].set(p['g2'][:, 0, :])
    vecs = vecs.at[:, 6, :E].set(p['be2'][:, 0, :])

    fin = jnp.concatenate([p['gf'], p['bf']], axis=0)  # (2, E)

    return dict(wattn=wattn.astype(jnp.bfloat16),
                wff=wff.astype(jnp.bfloat16),
                vecs=vecs, fin=fin)


def reference_forward(cat_inputs, p):
    """Pure-JAX f32 reference mirroring PyTorch TransformerEncoder (eval mode)."""
    embeds = [tab[cat_inputs[:, i]] for i, tab in enumerate(p['emb'])]
    x = jnp.stack(embeds, axis=1)
    B = x.shape[0]
    x = jnp.concatenate(
        [jnp.broadcast_to(p['cls_token'], (B, 1, EMBED_DIM)), x], axis=1)
    x = x.astype(jnp.float32)
    E, H = EMBED_DIM, NUM_HEADS
    dh = E // H
    scale = 1.0 / dh ** 0.5

    def ln(v, g, b):
        mu = v.mean(-1, keepdims=True)
        var = ((v - mu) ** 2).mean(-1, keepdims=True)
        return (v - mu) * jax.lax.rsqrt(var + EPS) * g + b

    for l in range(NUM_LAYERS):
        qkv = jnp.einsum('bse,ef->bsf', x, p['wqkv'][l],
                         precision=HIGHEST) + p['bqkv'][l]
        q, k, v = qkv[..., :E], qkv[..., E:2 * E], qkv[..., 2 * E:]
        q = q.reshape(B, -1, H, dh).transpose(0, 2, 1, 3)
        k = k.reshape(B, -1, H, dh).transpose(0, 2, 1, 3)
        v = v.reshape(B, -1, H, dh).transpose(0, 2, 1, 3)
        s = jnp.einsum('bhqd,bhkd->bhqk', q, k, precision=HIGHEST) * scale
        a = jax.nn.softmax(s, axis=-1)
        o = jnp.einsum('bhqk,bhkd->bhqd', a, v, precision=HIGHEST)
        o = o.transpose(0, 2, 1, 3).reshape(B, -1, E)
        o = jnp.einsum('bse,ef->bsf', o, p['woT'][l], precision=HIGHEST) + p['bo'][l]
        x = ln(x + o, p['g1'][l], p['be1'][l])
        hmid = jnp.maximum(
            jnp.einsum('bse,ef->bsf', x, p['w1T'][l], precision=HIGHEST) + p['b1'][l],
            0.0)
        ff = jnp.einsum('bsf,ef->bse', hmid, p['w2d'][l],
                        precision=HIGHEST) + p['b2'][l]
        x = ln(x + ff, p['g2'][l], p['be2'][l])
    cls = x[:, 0, :]
    return ln(cls, p['gf'], p['bf'])


if __name__ == "__main__":
    num_categories_list = [7, 5, 11, 3, 9]    # 5 categorical features -> seq len 6
    B = 4
    key = jax.random.PRNGKey(0)
    pkey, dkey = jax.random.split(key)
    params = init_params(pkey, num_categories_list)
    packed = pack_params(params)              # packed / bf16 / pre-scaled, built once

    dkeys = jax.random.split(dkey, len(num_categories_list))
    cols = [jax.random.randint(dkeys[i], (B,), 0, n, dtype=jnp.int32)
            for i, n in enumerate(num_categories_list)]
    cat_inputs = jnp.stack(cols, axis=1)      # (B, num_features) int32

    out = tab_transformer_forward(cat_inputs, params, packed)
    out = jax.block_until_ready(out)

    ref = reference_forward(cat_inputs, params)
    # Kernel uses bf16 weights + bf16 MXU passes (f32 accumulation) and the EUP
    # approx reciprocal; the reference is full-f32 HIGHEST precision.
    np.testing.assert_allclose(np.asarray(out), np.asarray(ref),
                               rtol=2.5e-2, atol=2.5e-2)
    print("KERNEL_OK")
</pallas_src>

<mosaic_0001>
module attributes {stable_mosaic.version = 11 : i64} {
  func.func @_tab_transformer_layer_kernel(%arg0: i32, %arg1: memref<24x8xf32, #tpu.memory_space<vmem>>, %arg2: memref<24x24xf32, #tpu.memory_space<vmem>>, %arg3: memref<1x16x24xbf16, #tpu.memory_space<vmem>>, %arg4: memref<1x17x2048xbf16, #tpu.memory_space<vmem>>, %arg5: memref<1x8x24xf32, #tpu.memory_space<vmem>>, %arg6: memref<2x8xf32, #tpu.memory_space<vmem>>, %arg7: memref<4x8xf32, #tpu.memory_space<vmem>>, %arg8: memref<24x8xf32, #tpu.memory_space<vmem>>) attributes {dimension_semantics = [#tpu.dimension_semantics<arbitrary>], iteration_bounds = array<i64: 2>, scalar_prefetch = 0 : i64, scratch_operands = 1 : i64, tpu.core_type = #tpu.core_type<tc>, window_params = [{pipeline_mode = #tpu.pipeline_mode<synchronous>, transform_indices = @transform_0, window_bounds = array<i64: 24, 8>}, {pipeline_mode = #tpu.pipeline_mode<synchronous>, transform_indices = @transform_1, window_bounds = array<i64: 24, 24>}, {transform_indices = @transform_2, window_bounds = array<i64: 1, 16, 24>}, {transform_indices = @transform_3, window_bounds = array<i64: 1, 17, 2048>}, {transform_indices = @transform_4, window_bounds = array<i64: 1, 8, 24>}, {pipeline_mode = #tpu.pipeline_mode<synchronous>, transform_indices = @transform_5, window_bounds = array<i64: 2, 8>}, {pipeline_mode = #tpu.pipeline_mode<synchronous>, transform_indices = @transform_6, window_bounds = array<i64: 4, 8>}]} {
    %c0_i32 = arith.constant 0 : i32
    %0 = arith.cmpi eq, %arg0, %c0_i32 : i32
    %1 = arith.extui %0 : i1 to i32
    %c0_i32_0 = arith.constant 0 : i32
    %2 = arith.cmpi ne, %1, %c0_i32_0 : i32
    scf.if %2 {
      %c0_57 = arith.constant 0 : index
      %c0_58 = arith.constant 0 : index
      %131 = vector.load %arg1[%c0_57, %c0_58] : memref<24x8xf32, #tpu.memory_space<vmem>>, vector<24x8xf32>
      %c0_59 = arith.constant 0 : index
      %c0_60 = arith.constant 0 : index
      %132 = vector.load %arg8[%c0_59, %c0_60] : memref<24x8xf32, #tpu.memory_space<vmem>>, vector<24x8xf32>
      tpu.vector_store %arg8[%c0_59, %c0_60], %131 {strides = array<i32>} : memref<24x8xf32, #tpu.memory_space<vmem>>, vector<24x8xf32>,
    } else {
    }
    %c0 = arith.constant 0 : index
    %c0_1 = arith.constant 0 : index
    %3 = vector.load %arg8[%c0, %c0_1] : memref<24x8xf32, #tpu.memory_space<vmem>>, vector<24x8xf32>
    %c0_2 = arith.constant 0 : index
    %c0_3 = arith.constant 0 : index
    %4 = vector.load %arg2[%c0_2, %c0_3] : memref<24x24xf32, #tpu.memory_space<vmem>>, vector<24x24xf32>
    %c0_4 = arith.constant 0 : index
    %c0_5 = arith.constant 0 : index
    %c0_6 = arith.constant 0 : index
    %5 = vector.load %arg3[%c0_4, %c0_5, %c0_6] : memref<1x16x24xbf16, #tpu.memory_space<vmem>>, vector<1x8x24xbf16>
    %6 = vector.shape_cast %5 : vector<1x8x24xbf16> to vector<8x24xbf16>
    %c0_7 = arith.constant 0 : index
    %c8 = arith.constant 8 : index
    %c0_8 = arith.constant 0 : index
    %7 = vector.load %arg3[%c0_7, %c8, %c0_8] : memref<1x16x24xbf16, #tpu.memory_space<vmem>>, vector<1x8x8xbf16>
    %8 = vector.shape_cast %7 : vector<1x8x8xbf16> to vector<8x8xbf16>
    %c0_9 = arith.constant 0 : index
    %c0_10 = arith.constant 0 : index
    %c0_11 = arith.constant 0 : index
    %9 = vector.load %arg4[%c0_9, %c0_10, %c0_11] : memref<1x17x2048xbf16, #tpu.memory_space<vmem>>, vector<1x8x2048xbf16>
    %10 = vector.shape_cast %9 : vector<1x8x2048xbf16> to vector<8x2048xbf16>
    %c0_12 = arith.constant 0 : index
    %c8_13 = arith.constant 8 : index
    %c0_14 = arith.constant 0 : index
    %11 = vector.load %arg4[%c0_12, %c8_13, %c0_14] : memref<1x17x2048xbf16, #tpu.memory_space<vmem>>, vector<1x8x2048xbf16>
    %12 = vector.shape_cast %11 : vector<1x8x2048xbf16> to vector<8x2048xbf16>
    %c0_15 = arith.constant 0 : index
    %c16 = arith.constant 16 : index
    %c0_16 = arith.constant 0 : index
    %13 = vector.load %arg4[%c0_15, %c16, %c0_16] : memref<1x17x2048xbf16, #tpu.memory_space<vmem>>, vector<1x1x2048xbf16>
    %14 = vector.shape_cast %13 : vector<1x1x2048xbf16> to vector<1x2048xbf16>
    %15 = arith.extf %14 : vector<1x2048xbf16> to vector<1x2048xf32>
    %c0_17 = arith.constant 0 : index
    %c0_18 = arith.constant 0 : index
    %c0_19 = arith.constant 0 : index
    %16 = vector.load %arg5[%c0_17, %c0_18, %c0_19] : memref<1x8x24xf32, #tpu.memory_space<vmem>>, vector<1x1x24xf32>
    %17 = vector.shape_cast %16 : vector<1x1x24xf32> to vector<1x24xf32>
    %c0_20 = arith.constant 0 : index
    %c1 = arith.constant 1 : index
    %c0_21 = arith.constant 0 : index
    %18 = vector.load %arg5[%c0_20, %c1, %c0_21] : memref<1x8x24xf32, #tpu.memory_space<vmem>>, vector<1x1x8xf32>
    %19 = vector.shape_cast %18 : vector<1x1x8xf32> to vector<1x8xf32>
    %c0_22 = arith.constant 0 : index
    %c2 = arith.constant 2 : index
    %c0_23 = arith.constant 0 : index
    %20 = vector.load %arg5[%c0_22, %c2, %c0_23] : memref<1x8x24xf32, #tpu.memory_space<vmem>>, vector<1x1x8xf32>
    %21 = vector.shape_cast %20 : vector<1x1x8xf32> to vector<1x8xf32>
    %c0_24 = arith.constant 0 : index
    %c3 = arith.constant 3 : index
    %c0_25 = arith.constant 0 : index
    %22 = vector.load %arg5[%c0_24, %c3, %c0_25] : memref<1x8x24xf32, #tpu.memory_space<vmem>>, vector<1x1x8xf32>
    %23 = vector.shape_cast %22 : vector<1x1x8xf32> to vector<1x8xf32>
    %c0_26 = arith.constant 0 : index
    %c4 = arith.constant 4 : index
    %c0_27 = arith.constant 0 : index
    %24 = vector.load %arg5[%c0_26, %c4, %c0_27] : memref<1x8x24xf32, #tpu.memory_space<vmem>>, vector<1x1x8xf32>
    %25 = vector.shape_cast %24 : vector<1x1x8xf32> to vector<1x8xf32>
    %c0_28 = arith.constant 0 : index
    %c5 = arith.constant 5 : index
    %c0_29 = arith.constant 0 : index
    %26 = vector.load %arg5[%c0_28, %c5, %c0_29] : memref<1x8x24xf32, #tpu.memory_space<vmem>>, vector<1x1x8xf32>
    %27 = vector.shape_cast %26 : vector<1x1x8xf32> to vector<1x8xf32>
    %c0_30 = arith.constant 0 : index
    %c6 = arith.constant 6 : index
    %c0_31 = arith.constant 0 : index
    %28 = vector.load %arg5[%c0_30, %c6, %c0_31] : memref<1x8x24xf32, #tpu.memory_space<vmem>>, vector<1x1x8xf32>
    %29 = vector.shape_cast %28 : vector<1x1x8xf32> to vector<1x8xf32>
    %30 = arith.truncf %3 : vector<24x8xf32> to vector<24x8xbf16>
    "tpu.trace_start"() <{level = 10 : i32, message = "ne,ef->nf"}> : () -> ()
    %cst = arith.constant dense<0.000000e+00> : vector<24x24xf32>
    %31 = tpu.matmul %30, %6, %cst {dimension_numbers = #tpu.dot_dimension_numbers<[1], [0], [0], [1], [0, 0, 1, 1], [], []>} : vector<24x8xbf16>, vector<8x24xbf16>, vector<24x24xf32> -> vector<24x24xf32>
    "tpu.trace_stop"() : () -> ()
    %32 = vector.broadcast %17 : vector<1x24xf32> to vector<24x24xf32>
    %33 = arith.addf %31, %32 : vector<24x24xf32>
    %34 = vector.extract_strided_slice %33 {offsets = [0, 0], sizes = [24, 4], strides = [1, 1]} : vector<24x24xf32> to vector<24x4xf32>
    %35 = vector.extract_strided_slice %33 {offsets = [0, 8], sizes = [24, 4], strides = [1, 1]} : vector<24x24xf32> to vector<24x4xf32>
    %36 = vector.extract_strided_slice %33 {offsets = [0, 16], sizes = [24, 4], strides = [1, 1]} : vector<24x24xf32> to vector<24x4xf32>
    "tpu.trace_start"() <{level = 10 : i32, message = "qd,kd->qk"}> : () -> ()
    %cst_32 = arith.constant dense<0.000000e+00> : vector<24x24xf32>
    %37 = tpu.matmul %34, %35, %cst_32 {dimension_numbers = #tpu.dot_dimension_numbers<[1], [1], [0], [0], [0, 0, 1, 0], [], []>} : vector<24x4xf32>, vector<24x4xf32>, vector<24x24xf32> -> vector<24x24xf32>
    "tpu.trace_stop"() : () -> ()
    %38 = arith.subf %37, %4 : vector<24x24xf32>
    %cst_33 = arith.constant dense<0xFF800000> : vector<24xf32>
    %39 = vector.multi_reduction <maximumf>, %38, %cst_33 [1] : vector<24x24xf32> to vector<24xf32>
    %40 = vector.shape_cast %39 : vector<24xf32> to vector<24x1xf32>
    %41 = vector.broadcast %40 : vector<24x1xf32> to vector<24x24xf32>
    %42 = arith.subf %38, %41 : vector<24x24xf32>
    %43 = math.exp %42 : vector<24x24xf32>
    %cst_34 = arith.constant dense<0.000000e+00> : vector<24xf32>
    %44 = vector.multi_reduction <add>, %43, %cst_34 [1] : vector<24x24xf32> to vector<24xf32>
    %45 = vector.shape_cast %44 : vector<24xf32> to vector<24x1xf32>
    %46 = tpu.reciprocal %45 {approx = true} : vector<24x1xf32> -> vector<24x1xf32>
    %47 = vector.broadcast %46 : vector<24x1xf32> to vector<24x24xf32>
    %48 = arith.mulf %43, %47 : vector<24x24xf32>
    "tpu.trace_start"() <{level = 10 : i32, message = "qk,kd->qd"}> : () -> ()
    %cst_35 = arith.constant dense<0.000000e+00> : vector<24x4xf32>
    %49 = tpu.matmul %48, %36, %cst_35 {dimension_numbers = #tpu.dot_dimension_numbers<[1], [0], [0], [1], [0, 0, 1, 1], [], []>} : vector<24x24xf32>, vector<24x4xf32>, vector<24x4xf32> -> vector<24x4xf32>
    "tpu.trace_stop"() : () -> ()
    %50 = vector.extract_strided_slice %33 {offsets = [0, 4], sizes = [24, 4], strides = [1, 1]} : vector<24x24xf32> to vector<24x4xf32>
    %51 = vector.extract_strided_slice %33 {offsets = [0, 12], sizes = [24, 4], strides = [1, 1]} : vector<24x24xf32> to vector<24x4xf32>
    %52 = vector.extract_strided_slice %33 {offsets = [0, 20], sizes = [24, 4], strides = [1, 1]} : vector<24x24xf32> to vector<24x4xf32>
    "tpu.trace_start"() <{level = 10 : i32, message = "qd,kd->qk"}> : () -> ()
    %cst_36 = arith.constant dense<0.000000e+00> : vector<24x24xf32>
    %53 = tpu.matmul %50, %51, %cst_36 {dimension_numbers = #tpu.dot_dimension_numbers<[1], [1], [0], [0], [0, 0, 1, 0], [], []>} : vector<24x4xf32>, vector<24x4xf32>, vector<24x24xf32> -> vector<24x24xf32>
    "tpu.trace_stop"() : () -> ()
    %54 = arith.subf %53, %4 : vector<24x24xf32>
    %cst_37 = arith.constant dense<0xFF800000> : vector<24xf32>
    %55 = vector.multi_reduction <maximumf>, %54, %cst_37 [1] : vector<24x24xf32> to vector<24xf32>
    %56 = vector.shape_cast %55 : vector<24xf32> to vector<24x1xf32>
    %57 = vector.broadcast %56 : vector<24x1xf32> to vector<24x24xf32>
    %58 = arith.subf %54, %57 : vector<24x24xf32>
    %59 = math.exp %58 : vector<24x24xf32>
    %cst_38 = arith.constant dense<0.000000e+00> : vector<24xf32>
    %60 = vector.multi_reduction <add>, %59, %cst_38 [1] : vector<24x24xf32> to vector<24xf32>
    %61 = vector.shape_cast %60 : vector<24xf32> to vector<24x1xf32>
    %62 = tpu.reciprocal %61 {approx = true} : vector<24x1xf32> -> vector<24x1xf32>
    %63 = vector.broadcast %62 : vector<24x1xf32> to vector<24x24xf32>
    %64 = arith.mulf %59, %63 : vector<24x24xf32>
    "tpu.trace_start"() <{level = 10 : i32, message = "qk,kd->qd"}> : () -> ()
    %cst_39 = arith.constant dense<0.000000e+00> : vector<24x4xf32>
    %65 = tpu.matmul %64, %52, %cst_39 {dimension_numbers = #tpu.dot_dimension_numbers<[1], [0], [0], [1], [0, 0, 1, 1], [], []>} : vector<24x24xf32>, vector<24x4xf32>, vector<24x4xf32> -> vector<24x4xf32>
    "tpu.trace_stop"() : () -> ()
    %66 = tpu.concatenate %49, %65 in 1 : vector<24x4xf32>, vector<24x4xf32> -> vector<24x8xf32>
    %67 = arith.truncf %66 : vector<24x8xf32> to vector<24x8xbf16>
    "tpu.trace_start"() <{level = 10 : i32, message = "ne,ef->nf"}> : () -> ()
    %cst_40 = arith.constant dense<0.000000e+00> : vector<24x8xf32>
    %68 = tpu.matmul %67, %8, %cst_40 {dimension_numbers = #tpu.dot_dimension_numbers<[1], [0], [0], [1], [0, 0, 1, 1], [], []>} : vector<24x8xbf16>, vector<8x8xbf16>, vector<24x8xf32> -> vector<24x8xf32>
    "tpu.trace_stop"() : () -> ()
    %69 = vector.broadcast %19 : vector<1x8xf32> to vector<24x8xf32>
    %70 = arith.addf %68, %69 : vector<24x8xf32>
    %71 = arith.addf %3, %70 : vector<24x8xf32>
    %cst_41 = arith.constant dense<0.000000e+00> : vector<24xf32>
    %72 = vector.multi_reduction <add>, %71, %cst_41 [1] : vector<24x8xf32> to vector<24xf32>
    %73 = vector.shape_cast %72 : vector<24xf32> to vector<24x1xf32>
    %cst_42 = arith.constant 8.000000e+00 : f32
    %74 = vector.broadcast %cst_42 : f32 to vector<24x1xf32>
    %75 = arith.divf %73, %74 : vector<24x1xf32>
    %76 = vector.broadcast %75 : vector<24x1xf32> to vector<24x8xf32>
    %77 = arith.subf %71, %76 : vector<24x8xf32>
    %78 = arith.mulf %77, %77 : vector<24x8xf32>
    %cst_43 = arith.constant dense<0.000000e+00> : vector<24xf32>
    %79 = vector.multi_reduction <add>, %78, %cst_43 [1] : vector<24x8xf32> to vector<24xf32>
    %80 = vector.shape_cast %79 : vector<24xf32> to vector<24x1xf32>
    %cst_44 = arith.constant 8.000000e+00 : f32
    %81 = vector.broadcast %cst_44 : f32 to vector<24x1xf32>
    %82 = arith.divf %80, %81 : vector<24x1xf32>
    %83 = vector.broadcast %75 : vector<24x1xf32> to vector<24x8xf32>
    %84 = arith.subf %71, %83 : vector<24x8xf32>
    %cst_45 = arith.constant 9.99999974E-6 : f32
    %85 = vector.broadcast %cst_45 : f32 to vector<24x1xf32>
    %86 = arith.addf %82, %85 : vector<24x1xf32>
    %87 = math.rsqrt %86 : vector<24x1xf32>
    %88 = vector.broadcast %87 : vector<24x1xf32> to vector<24x8xf32>
    %89 = arith.mulf %84, %88 : vector<24x8xf32>
    %90 = vector.broadcast %23 : vector<1x8xf32> to vector<24x8xf32>
    %91 = arith.mulf %89, %90 : vector<24x8xf32>
    %92 = vector.broadcast %25 : vector<1x8xf32> to vector<24x8xf32>
    %93 = arith.addf %91, %92 : vector<24x8xf32>
    %94 = arith.truncf %93 : vector<24x8xf32> to vector<24x8xbf16>
    "tpu.trace_start"() <{level = 10 : i32, message = "ne,ef->nf"}> : () -> ()
    %cst_46 = arith.constant dense<0.000000e+00> : vector<24x2048xf32>
    %95 = tpu.matmul %94, %10, %cst_46 {dimension_numbers = #tpu.dot_dimension_numbers<[1], [0], [0], [1], [0, 0, 1, 1], [], []>} : vector<24x8xbf16>, vector<8x2048xbf16>, vector<24x2048xf32> -> vector<24x2048xf32>
    "tpu.trace_stop"() : () -> ()
    %96 = vector.broadcast %15 : vector<1x2048xf32> to vector<24x2048xf32>
    %97 = arith.addf %95, %96 : vector<24x2048xf32>
    %cst_47 = arith.constant 0.000000e+00 : f32
    %98 = vector.broadcast %cst_47 : f32 to vector<24x2048xf32>
    %99 = arith.maximumf %97, %98 : vector<24x2048xf32>
    %100 = arith.truncf %99 : vector<24x2048xf32> to vector<24x2048xbf16>
    "tpu.trace_start"() <{level = 10 : i32, message = "nf,ef->ne"}> : () -> ()
    %cst_48 = arith.constant dense<0.000000e+00> : vector<24x8xf32>
    %101 = tpu.matmul %100, %12, %cst_48 {dimension_numbers = #tpu.dot_dimension_numbers<[1], [1], [0], [0], [0, 0, 1, 0], [], []>} : vector<24x2048xbf16>, vector<8x2048xbf16>, vector<24x8xf32> -> vector<24x8xf32>
    "tpu.trace_stop"() : () -> ()
    %102 = vector.broadcast %21 : vector<1x8xf32> to vector<24x8xf32>
    %103 = arith.addf %101, %102 : vector<24x8xf32>
    %104 = arith.addf %93, %103 : vector<24x8xf32>
    %cst_49 = arith.constant dense<0.000000e+00> : vector<24xf32>
    %105 = vector.multi_reduction <add>, %104, %cst_49 [1] : vector<24x8xf32> to vector<24xf32>
    %106 = vector.shape_cast %105 : vector<24xf32> to vector<24x1xf32>
    %cst_50 = arith.constant 8.000000e+00 : f32
    %107 = vector.broadcast %cst_50 : f32 to vector<24x1xf32>
    %108 = arith.divf %106, %107 : vector<24x1xf32>
    %109 = vector.broadcast %108 : vector<24x1xf32> to vector<24x8xf32>
    %110 = arith.subf %104, %109 : vector<24x8xf32>
    %111 = arith.mulf %110, %110 : vector<24x8xf32>
    %cst_51 = arith.constant dense<0.000000e+00> : vector<24xf32>
    %112 = vector.multi_reduction <add>, %111, %cst_51 [1] : vector<24x8xf32> to vector<24xf32>
    %113 = vector.shape_cast %112 : vector<24xf32> to vector<24x1xf32>
    %cst_52 = arith.constant 8.000000e+00 : f32
    %114 = vector.broadcast %cst_52 : f32 to vector<24x1xf32>
    %115 = arith.divf %113, %114 : vector<24x1xf32>
    %116 = vector.broadcast %108 : vector<24x1xf32> to vector<24x8xf32>
    %117 = arith.subf %104, %116 : vector<24x8xf32>
    %cst_53 = arith.constant 9.99999974E-6 : f32
    %118 = vector.broadcast %cst_53 : f32 to vector<24x1xf32>
    %119 = arith.addf %115, %118 : vector<24x1xf32>
    %120 = math.rsqrt %119 : vector<24x1xf32>
    %121 = vector.broadcast %120 : vector<24x1xf32> to vector<24x8xf32>
    %122 = arith.mulf %117, %121 : vector<24x8xf32>
    %123 = vector.broadcast %27 : vector<1x8xf32> to vector<24x8xf32>
    %124 = arith.mulf %122, %123 : vector<24x8xf32>
    %125 = vector.broadcast %29 : vector<1x8xf32> to vector<24x8xf32>
    %126 = arith.addf %124, %125 : vector<24x8xf32>
    %c0_54 = arith.constant 0 : index
    %c0_55 = arith.constant 0 : index
    %127 = vector.load %arg8[%c0_54, %c0_55] : memref<24x8xf32, #tpu.memory_space<vmem>>, vector<24x8xf32>
    tpu.vector_store %arg8[%c0_54, %c0_55], %126 {strides = array<i32>} : memref<24x8xf32, #tpu.memory_space<vmem>>, vector<24x8xf32>,
    %c1_i32 = arith.constant 1 : i32
    %128 = arith.cmpi eq, %arg0, %c1_i32 : i32
    %129 = arith.extui %128 : i1 to i32
    %c0_i32_56 = arith.constant 0 : i32
    %130 = arith.cmpi ne, %129, %c0_i32_56 : i32
    scf.if %130 {
      %131 = vector.extract_strided_slice %126 {offsets = [0, 0], sizes = [4, 8], strides = [1, 1]} : vector<24x8xf32> to vector<4x8xf32>
      %c0_57 = arith.constant 0 : index
      %c0_58 = arith.constant 0 : index
      %132 = vector.load %arg6[%c0_57, %c0_58] : memref<2x8xf32, #tpu.memory_space<vmem>>, vector<1x8xf32>
      %c1_59 = arith.constant 1 : index
      %c0_60 = arith.constant 0 : index
      %133 = vector.load %arg6[%c1_59, %c0_60] : memref<2x8xf32, #tpu.memory_space<vmem>>, vector<1x8xf32>
      %cst_61 = arith.constant dense<0.000000e+00> : vector<4xf32>
      %134 = vector.multi_reduction <add>, %131, %cst_61 [1] : vector<4x8xf32> to vector<4xf32>
      %135 = vector.shape_cast %134 : vector<4xf32> to vector<4x1xf32>
      %cst_62 = arith.constant 8.000000e+00 : f32
      %136 = vector.broadcast %cst_62 : f32 to vector<4x1xf32>
      %137 = arith.divf %135, %136 : vector<4x1xf32>
      %138 = vector.broadcast %137 : vector<4x1xf32> to vector<4x8xf32>
      %139 = arith.subf %131, %138 : vector<4x8xf32>
      %140 = arith.mulf %139, %139 : vector<4x8xf32>
      %cst_63 = arith.constant dense<0.000000e+00> : vector<4xf32>
      %141 = vector.multi_reduction <add>, %140, %cst_63 [1] : vector<4x8xf32> to vector<4xf32>
      %142 = vector.shape_cast %141 : vector<4xf32> to vector<4x1xf32>
      %cst_64 = arith.constant 8.000000e+00 : f32
      %143 = vector.broadcast %cst_64 : f32 to vector<4x1xf32>
      %144 = arith.divf %142, %143 : vector<4x1xf32>
      %145 = vector.broadcast %137 : vector<4x1xf32> to vector<4x8xf32>
      %146 = arith.subf %131, %145 : vector<4x8xf32>
      %cst_65 = arith.constant 9.99999974E-6 : f32
      %147 = vector.broadcast %cst_65 : f32 to vector<4x1xf32>
      %148 = arith.addf %144, %147 : vector<4x1xf32>
      %149 = math.rsqrt %148 : vector<4x1xf32>
      %150 = vector.broadcast %149 : vector<4x1xf32> to vector<4x8xf32>
      %151 = arith.mulf %146, %150 : vector<4x8xf32>
      %152 = vector.broadcast %132 : vector<1x8xf32> to vector<4x8xf32>
      %153 = arith.mulf %151, %152 : vector<4x8xf32>
      %154 = vector.broadcast %133 : vector<1x8xf32> to vector<4x8xf32>
      %155 = arith.addf %153, %154 : vector<4x8xf32>
      %c0_66 = arith.constant 0 : index
      %c0_67 = arith.constant 0 : index
      %156 = vector.load %arg7[%c0_66, %c0_67] : memref<4x8xf32, #tpu.memory_space<vmem>>, vector<4x8xf32>
      tpu.vector_store %arg7[%c0_66, %c0_67], %155 {strides = array<i32>} : memref<4x8xf32, #tpu.memory_space<vmem>>, vector<4x8xf32>,
    } else {
    }
    return
  }
  func.func @transform_0(%arg0: i32) -> (i32, i32) {
    %c0_i32 = arith.constant 0 : i32
    %c0_i32_0 = arith.constant 0 : i32
    %c0_i32_1 = arith.constant 0 : i32
    return %c0_i32, %c0_i32_0 : i32, i32
  }
  func.func @transform_1(%arg0: i32) -> (i32, i32) {
    %c0_i32 = arith.constant 0 : i32
    %c0_i32_0 = arith.constant 0 : i32
    %c0_i32_1 = arith.constant 0 : i32
    return %c0_i32, %c0_i32_0 : i32, i32
  }
  func.func @transform_2(%arg0: i32) -> (i32, i32, i32) {
    %c0_i32 = arith.constant 0 : i32
    %c0_i32_0 = arith.constant 0 : i32
    %c0_i32_1 = arith.constant 0 : i32
    return %arg0, %c0_i32, %c0_i32_0 : i32, i32, i32
  }
  func.func @transform_3(%arg0: i32) -> (i32, i32, i32) {
    %c0_i32 = arith.constant 0 : i32
    %c0_i32_0 = arith.constant 0 : i32
    %c0_i32_1 = arith.constant 0 : i32
    return %arg0, %c0_i32, %c0_i32_0 : i32, i32, i32
  }
  func.func @transform_4(%arg0: i32) -> (i32, i32, i32) {
    %c0_i32 = arith.constant 0 : i32
    %c0_i32_0 = arith.constant 0 : i32
    %c0_i32_1 = arith.constant 0 : i32
    return %arg0, %c0_i32, %c0_i32_0 : i32, i32, i32
  }
  func.func @transform_5(%arg0: i32) -> (i32, i32) {
    %c0_i32 = arith.constant 0 : i32
    %c0_i32_0 = arith.constant 0 : i32
    %c0_i32_1 = arith.constant 0 : i32
    return %c0_i32, %c0_i32_0 : i32, i32
  }
  func.func @transform_6(%arg0: i32) -> (i32, i32) {
    %c0_i32 = arith.constant 0 : i32
    %c0_i32_0 = arith.constant 0 : i32
    %c0_i32_1 = arith.constant 0 : i32
    return %c0_i32, %c0_i32_0 : i32, i32
  }
}

</mosaic_0001>

<bundles_post_ra>
// kernel: tpu_custom_call.1
= control target key start
LH: loop header
LB: loop body
LE: loop exit
PB: predicated region body
PF: predicated region fallthrough
CT: control target
= control target key end

     0   :  { %11 = vsyncpa [#allocation4], 0  ;;  %s2694_s21 = smov 0   ;;  %s3074_s0 = inlined_call_operand.vmem [shape: f32[24,8], index: 0, kind: input, shape index: {}]   ;;  %s3075_s1 = inlined_call_operand.vmem [shape: f32[24,24], index: 1, kind: input, shape index: {}]   ;;  %s3076_s2 = inlined_call_operand.vmem [shape: bf16[2,16,24], index: 2, kind: input, shape index: {}]   ;;  %s3077_s3 = inlined_call_operand.vmem [shape: bf16[2,17,2048], index: 3, kind: input, shape index: {}]   ;;  %s3078_s4 = inlined_call_operand.vmem [shape: f32[2,8,24], index: 4, kind: input, shape index: {}]   ;;  %s3079_s5 = inlined_call_operand.vmem [shape: f32[2,8], index: 5, kind: input, shape index: {}]   ;;  %s3080_s6 = inlined_call_operand.hbm [shape: f32[4,8], index: 6, kind: output, shape index: {}]  }
   0x1 LB: > { %s2700_s22 = sadd.s32 4294967295, %s2646_s21   ;;  %p2272_p0 = scmp.ge.s32.totalorder %s2646_s21, 1  ;;  %s2646_s21 = sphi %s2694_s21, %s17_s21  }
   0x2   : > { %p227_p1 = scmp.lt.s32.totalorder %s2646_s21, 3 }
   0x4   : > { %p228_p2 = pnand %p2272_p0, %p227_p1 }
   0x5   : > { %p261_p3 = scmp.lt.s32.totalorder (!%p228_p2), %s2700_s22, 1  ;;  %p2277_p4 = scmp.ne.s32.totalorder (!%p228_p2), %s2700_s22, 0 }
   0x6   : > { %231 = sbr.rel (%p228_p2) target bundleno = 3460 (0xd84), region = 44 }
   0xd   : > { %s262_s23 = scalar_select %p261_p3, %s2700_s22, 1 }
   0xe   : > { %279 = sbr.rel (%p2277_p4) target bundleno = 21 (0x15), region = 48  ;;  %v280_v0 = vld [vmem:[%s3074_s0] sm:$0xff] (!%p2277_p4)  ;;  %vm283_vm0 = vcmask (!%p2277_p4), 64512   ;;  %v281_v1 = vld [vmem:[%s3074_s0 + $0x8] sm:$0xff] (!%p2277_p4)  ;;  %v282_v2 = vld [vmem:[%s3074_s0 + $0x10] sm:$0xff] (!%p2277_p4) }
   0xf   : > { %s2370_s24 = sshll.u32 %s262_s23, 3  ;;  %s2489_s25 = smul.u32 192, %s262_s23  ;;  %284 = vst.msk [vmem:[#allocation2] sm:$0xff] (!%p2277_p4), %vm283_vm0, %v280_v0  ;;  %285 = vst.msk [vmem:[#allocation2 + $0x8] sm:$0xff] (!%p2277_p4), %vm283_vm0, %v281_v1 }
  0x10   : > { %s2709_s28 = scalar_lea.vmem %s3076_s2, %s2370_s24  ;;  %s2714_s7 = scalar_lea.vmem %s3078_s4, %s2370_s24  ;;  %286 = vst.msk [vmem:[#allocation2 + $0x10] sm:$0xff] (!%p2277_p4), %vm283_vm0, %v282_v2 }
  0x11   : > { %s2719_s10 = scalar_lea.vmem %s3077_s3, %s2489_s25 }
  0x15 PF: > { %v293_v3 = vld [vmem:[%s2709_s28] sm:$0xf]  ;;  %vm355_vm1 = vcmask 1043456   ;;  %vm348_vm2 = vcmask 64512   ;;  %v2648_v10 = vmov 0.0|0.0   ;;  %s2649_s17 = smov 120  }
  0x16   : > { %v2732_v4 = vld [vmem:[#allocation2] sm:$0xff]  ;;  %v2734_v5 = vld [vmem:[#allocation2 + $0x8] sm:$0xff]  ;;  %2487 = vmatprep.subr.msk.bf16.mxu1 %vm355_vm1, %v293_v3  ;;  %v357_v6 = vsel %vm355_vm1, %v293_v3, 0  ;;  %2477 = vmatprep.subr.bf16.mxu0 %v2648_v10  ;;  %vm2650_vm3 = vmmov 0   ;;  %v2651_v19 = vmov 0.0   ;;  %vm416_vm4 = vcmask 31744  }
  0x17   : > { %v342_v7 = vpack.c.bf16 %v2734_v5, %v2732_v4  ;;  %v2740_v8 = vld [vmem:[#allocation2 + $0x10] sm:$0xff]  ;;  %2402 = vmatpush3.bf16.msra.mxu1 %v357_v6  ;;  %v2278_v12 = vld [vmem:[%s2714_s7] ss:$0 sm:$0xff]  ;;  %2428 = vmatprep.mubr.msk.f32.mxu0 %vm2650_vm3, %v2651_v19  ;;  %vm2764_vm5 = vmpackc.low %vm416_vm4, %vm416_vm4  ;;  %vm512_vm6 = vcmask 195584   ;;  %s2652_s26 = smov 112   ;;  %s2653_s27 = smov 116  }
  0x18   : > { %v343_v9 = vpack.c.bf16 %v2740_v8, %v2740_v8  ;;  %2473 = vmatprep.subr.bf16.mxu1 %v2648_v10  ;;  %v2787_v27 = vld [vmem:[%s3075_s1] sm:$0xff]  ;;  %v2793_v31 = vld [vmem:[%s3075_s1 + $0x8] sm:$0xff]  ;;  %v2800_v36 = vld [vmem:[%s3075_s1 + $0x10] sm:$0xff]  ;;  %s2654_s29 = smov 124   ;;  %s2655_s30 = smov 108  }
  0x19   : > { %2403 = vmatprep.mubr.msk.bf16.mxu1 %vm348_vm2, %v342_v7  ;;  %s2656_s8 = smov 4   ;;  %p2363_p5 = scmp.ne.s32.totalorder %s2700_s22, 1 }
  0x1a   : > { %2404 = vmatmul.mubr.msk.bf16.vlgmr.msra.gmra.mrb[0].mxu1 %vm348_vm2, %v343_v9  ;;  %vm2174_vm7 = vcmask (!%p2363_p5), 60416  }
  0x1b   : > { %2413 = vmatprep.mubr.msk.f32.mxu1 %vm2650_vm3, %v2651_v19 }
  0xed   : > { %v2405_v11 = vpop.f32.mrb[0].mxu1 }
  0xee   : > { %v393_v13 = vpop.f32.mrb[1].mxu1  ;;  %v2759_v20 = vadd.f32 %v2405_v11, %v2278_v12 }
  0xef   : > { %v2406_v14 = vpop.f32.mrb[2].mxu1  ;;  %v394_v16 = vadd.f32 %v2278_v12, %v393_v13 }
  0xf0   : > { %v396_v15 = vpop.f32.mrb[3].mxu1 }
  0xf1   : > { %v2749_v17 = vadd.f32 %v2278_v12, %v396_v15 }
  0xf3   : > { %v2752_v18 = vpack.i.bf16 %v2749_v17, %v394_v16 }
  0xf5   : > { %2516 = vrot.lane.b32.xlu0 %v2752_v18, %s2649_s17 }
  0xf9   : > { %414 = vrot.lane.b32.xlu0 %v2759_v20, %s2649_s17 }
 0x167   : > { %v2517_v21 = vpop.permute.xlu0 %2516 }
 0x168   : > { %v2519_v22 = vunpack.i.h.bf16 %v2517_v21  ;;  %v2518_v23 = vunpack.i.l.bf16 %v2517_v21 }
 0x16a   : > { %v2474_v25 = vpack.c.bf16 %v2519_v22, %v2518_v23 }
 0x16b   : > { %v415_v26 = vpop.permute.xlu0 %414 }
 0x16c   : > { %2476 = vmatpush3.bf16.xpose.msk.msra.mxu1 %vm2764_vm5, %v2474_v25 }
 0x16d   : > { %2411 = vmatprep.subr.mxu1 %v2651_v19 }
 0x174   : > { %2412 = vmatpush3.xpose.msk.msra.mxu1 %vm416_vm4, %v415_v26 }
 0x175   : > { %2484 = vmatprep.subr.bf16.mxu1 %v2648_v10 }
 0x177   : > { %2414 = vmatmul.mubr.msk.f32.vlgmr.msra.gmra.mrb[4].mxu1 %vm416_vm4, %v394_v16 }
 0x178   : > { %2416 = vmatprep.mubr.msk.f32.mxu1 %vm2650_vm3, %v2651_v19 }
 0x17b   : > { %2417 = vmatmul.mubr.msk.f32.gmra.mrb[6].mxu1 %vm416_vm4, %v2749_v17 }
 0x17c   : > { %2419 = vmatprep.mubr.msk.f32.mxu1 %vm2650_vm3, %v2651_v19 }
 0x17f   : > { %2420 = vmatmul.mubr.msk.f32.gmra.mrb[8].mxu1 %vm416_vm4, %v2759_v20 }
 0x180   : > { %2458 = vmatprep.mubr.msk.f32.mxu1 %vm2650_vm3, %v2651_v19 }
 0x24a   : > { %v495_v28 = vpop.f32.mrb[4].mxu1 }
 0x24b   : > { %v509_v29 = vsub.f32 %v495_v28, %v2787_v27  ;;  %v2415_v30 = vpop.f32.mrb[5].mxu1 }
 0x24d   : > { %v513_v32 = vsel %vm512_vm6, %v509_v29, -inf }
 0x24e   : > { %514 = vmax.xlane.f32.xlu1 %v513_v32  ;;  %v500_v33 = vpop.f32.mrb[6].mxu1 }
 0x24f   : > { %v510_v34 = vsub.f32 %v500_v33, %v2793_v31  ;;  %v2418_v35 = vpop.f32.mrb[7].mxu1 }
 0x251   : > { %v516_v37 = vsel %vm512_vm6, %v510_v34, -inf }
 0x252   : > { %517 = vmax.xlane.f32.xlu1 %v516_v37  ;;  %v505_v38 = vpop.f32.mrb[8].mxu1 }
 0x253   : > { %v511_v39 = vsub.f32 %v505_v38, %v2800_v36  ;;  %v2421_v40 = vpop.f32.mrb[9].mxu1 }
 0x255   : > { %v519_v41 = vsel %vm512_vm6, %v511_v39, -inf }
 0x256   : > { %520 = vmax.xlane.f32.xlu0 %v519_v41 }
 0x263   : > { %2521 = vrot.lane.b32.xlu1 %v2752_v18, %s2652_s26 }
 0x267   : > { %550 = vrot.lane.b32.xlu1 %v2759_v20, %s2652_s26 }
 0x26b   : > { %654 = vrot.lane.b32.xlu1 %v2759_v20, %s2653_s27 }
 0x26c   : > { %2526 = vrot.lane.b32.xlu0 %v2752_v18, %s2653_s27 }
 0x26f   : > { %644 = vrot.lane.b32.xlu1 %v394_v16, %s2654_s29 }
 0x2db   : > { %v515_v42 = vpop.xlane.xlu1 %514 }
 0x2dc   : > { %v522_v43 = vsub.f32 %v509_v29, %v515_v42 }
 0x2de   : > { %v525_v44 = vmul.f32 1.442695, %v522_v43 }
 0x2df   : > { %v518_v45 = vpop.xlane.xlu1 %517 }
 0x2e0   : > { %2572 = vpow2.f32 %v525_v44  ;;  %v523_v46 = vsub.f32 %v510_v34, %v518_v45 }
 0x2e2   : > { %v527_v47 = vmul.f32 1.442695, %v523_v46 }
 0x2e3   : > { %v2522_v48 = vpop.permute.xlu1 %2521  ;;  %v521_v49 = vpop.xlane.xlu0 %520 }
 0x2e4   : > { %2574 = vpow2.f32 %v527_v47  ;;  %v2524_v50 = vunpack.i.h.bf16 %v2522_v48  ;;  %v2523_v51 = vunpack.i.l.bf16 %v2522_v48  ;;  %v524_v52 = vsub.f32 %v511_v39, %v521_v49 }
 0x2e6   : > { %v529_v53 = vmul.f32 1.442695, %v524_v52  ;;  %v2478_v54 = vpack.c.bf16 %v2524_v50, %v2523_v51 }
 0x2e7   : > { %v551_v56 = vpop.permute.xlu1 %550  ;;  %v2527_v2 = vpop.permute.xlu0 %2526 }
 0x2e8   : > { %2576 = vpow2.f32 %v529_v53  ;;  %2479 = vmatpush3.bf16.msra.mxu0 %v2478_v54  ;;  %v2529_v6 = vunpack.i.h.bf16 %v2527_v2  ;;  %v2528_v7 = vunpack.i.l.bf16 %v2527_v2  ;;  %v294_v2 = vld [vmem:[%s2709_s28 + $0x4] sm:$0xf] }
 0x2e9   : > { %2426 = vmatprep.subr.mxu0 %v2651_v19 }
 0x2ea   : > { %v2573_v55 = vpop.eup %2572  ;;  %v2481_v11 = vpack.c.bf16 %v2529_v6, %v2528_v7 }
 0x2eb   : > { %v531_v57 = vsel %vm512_vm6, %v2573_v55, 0.0  ;;  %v655_v62 = vpop.permute.xlu1 %654 }
 0x2ec   : > { %532 = vadd.xlane.f32.xlu1 %v531_v57  ;;  %2427 = vmatpush3.msra.mxu0 %v551_v56 }
 0x2ed   : > { %2480 = vmatprep.subr.bf16.mxu0 %v2648_v10 }
 0x2ee   : > { %v2575_v58 = vpop.eup %2574 }
 0x2ef   : > { %v534_v59 = vsel %vm512_vm6, %v2575_v58, 0.0  ;;  %v645_v63 = vpop.permute.xlu1 %644 }
 0x2f0   : > { %535 = vadd.xlane.f32.xlu1 %v534_v59 }
 0x2f2   : > { %v2577_v60 = vpop.eup %2576 }
 0x2f3   : > { %v537_v61 = vsel %vm512_vm6, %v2577_v60, 0.0 }
 0x2f4   : > { %538 = vadd.xlane.f32.xlu1 %v537_v61 }
 0x305   : > { %646 = vrot.lane.b32.xlu1 %v2749_v17, %s2654_s29 }
 0x309   : > { %648 = vrot.lane.b32.xlu1 %v2759_v20, %s2654_s29 }
 0x379   : > { %v533_v0 = vpop.xlane.xlu1 %532 }
 0x37a   : > { %2578 = vrcp.f32 %v533_v0 }
 0x37d   : > { %v536_v1 = vpop.xlane.xlu1 %535 }
 0x37e   : > { %2580 = vrcp.f32 %v536_v1 }
 0x381   : > { %v539_v3 = vpop.xlane.xlu1 %538 }
 0x382   : > { %2582 = vrcp.f32 %v539_v3  ;;  %v910_v3 = vsel %vm355_vm1, %v294_v2, 0 }
 0x384   : > { %v2579_v9 = vpop.eup %2578 }
 0x385   : > { %v543_v10 = vmul.f32 %v2579_v9, %v2573_v55  ;;  %v647_v16 = vpop.permute.xlu1 %646 }
 0x387   : > { %2429 = vmatmul.mubr.msk.f32.vlgmr.msra.gmra.mrb[0].mxu0 %vm512_vm6, %v543_v10 }
 0x388   : > { %v2581_v12 = vpop.eup %2580  ;;  %2483 = vmatpush3.bf16.xpose.msk.msra.mxu0 %vm2764_vm5, %v2481_v11  ;;  %2431 = vmatprep.mubr.msk.f32.mxu0 %vm2650_vm3, %v2651_v19 }
 0x389   : > { %v544_v13 = vmul.f32 %v2581_v12, %v2575_v58  ;;  %2441 = vmatprep.subr.mxu0 %v2651_v19  ;;  %v649_v17 = vpop.permute.xlu1 %648 }
 0x38b   : > { %2432 = vmatmul.mubr.msk.f32.gmra.mrb[2].mxu0 %vm512_vm6, %v544_v13 }
 0x38c   : > { %v2583_v14 = vpop.eup %2582  ;;  %2434 = vmatprep.mubr.msk.f32.mxu0 %vm2650_vm3, %v2651_v19 }
 0x38d   : > { %v545_v15 = vmul.f32 %v2583_v14, %v2577_v60 }
 0x38f   : > { %2435 = vmatmul.mubr.msk.f32.gmra.mrb[4].mxu0 %vm512_vm6, %v545_v15 }
 0x390   : > { %2442 = vmatpush3.xpose.msk.msra.mxu0 %vm416_vm4, %v655_v62  ;;  %2443 = vmatprep.mubr.msk.f32.mxu0 %vm2650_vm3, %v2651_v19 }
 0x391   : > { %2488 = vmatprep.subr.msk.bf16.mxu0 %vm355_vm1, %v294_v2 }
 0x393   : > { %2444 = vmatmul.mubr.msk.f32.vlgmr.msra.gmra.mrb[6].mxu0 %vm416_vm4, %v645_v63 }
 0x394   : > { %2446 = vmatprep.mubr.msk.f32.mxu0 %vm2650_vm3, %v2651_v19  ;;  %2468 = vmatpush3.bf16.msra.mxu0 %v910_v3 }
 0x397   : > { %2447 = vmatmul.mubr.msk.f32.gmra.mrb[8].mxu0 %vm416_vm4, %v647_v16 }
 0x398   : > { %2449 = vmatprep.mubr.msk.f32.mxu0 %vm2650_vm3, %v2651_v19 }
 0x39b   : > { %2450 = vmatmul.mubr.msk.f32.gmra.mrb[10].mxu0 %vm416_vm4, %v649_v17 }
 0x45a   : > { %v2839_v21 = vpop.f32.mrb[0].mxu0 }
 0x45b   : > { %v2430_v22 = vpop.f32.mrb[1].mxu0 }
 0x45e   : > { %v2841_v23 = vpop.f32.mrb[2].mxu0 }
 0x45f   : > { %v2433_v24 = vpop.f32.mrb[3].mxu0 }
 0x462   : > { %v2843_v25 = vpop.f32.mrb[4].mxu0 }
 0x463   : > { %v2436_v26 = vpop.f32.mrb[5].mxu0 }
 0x466   : > { %v734_v28 = vpop.f32.mrb[6].mxu0 }
 0x467   : > { %v748_v29 = vsub.f32 %v734_v28, %v2787_v27  ;;  %v2445_v30 = vpop.f32.mrb[7].mxu0 }
 0x469   : > { %v751_v32 = vsel %vm512_vm6, %v748_v29, -inf }
 0x46a   : > { %752 = vmax.xlane.f32.xlu1 %v751_v32  ;;  %v739_v33 = vpop.f32.mrb[8].mxu0 }
 0x46b   : > { %v749_v34 = vsub.f32 %v739_v33, %v2793_v31  ;;  %v2448_v35 = vpop.f32.mrb[9].mxu0 }
 0x46d   : > { %v754_v37 = vsel %vm512_vm6, %v749_v34, -inf }
 0x46e   : > { %755 = vmax.xlane.f32.xlu0 %v754_v37  ;;  %v744_v38 = vpop.f32.mrb[10].mxu0 }
 0x46f   : > { %v750_v39 = vsub.f32 %v744_v38, %v2800_v36  ;;  %v2451_v40 = vpop.f32.mrb[11].mxu0 }
 0x471   : > { %v757_v41 = vsel %vm512_vm6, %v750_v39, -inf }
 0x472   : > { %758 = vmax.xlane.f32.xlu0 %v757_v41 }
 0x4f7   : > { %v753_v42 = vpop.xlane.xlu1 %752 }
 0x4f8   : > { %v760_v27 = vsub.f32 %v748_v29, %v753_v42  ;;  %v2299_v29 = vld [vmem:[%s2714_s7 + $0x1] ss:$0 sm:$0xff] }
 0x4fa   : > { %v763_v43 = vmul.f32 1.442695, %v760_v27 }
 0x4fb   : > { %v756_v44 = vpop.xlane.xlu0 %755 }
 0x4fc   : > { %2584 = vpow2.f32 %v763_v43  ;;  %v761_v45 = vsub.f32 %v749_v34, %v756_v44 }
 0x4fe   : > { %v765_v46 = vmul.f32 1.442695, %v761_v45 }
 0x4ff   : > { %v759_v47 = vpop.xlane.xlu0 %758 }
 0x500   : > { %2586 = vpow2.f32 %v765_v46  ;;  %v762_v31 = vsub.f32 %v750_v39, %v759_v47 }
 0x502   : > { %v767_v48 = vmul.f32 1.442695, %v762_v31 }
 0x504   : > { %2588 = vpow2.f32 %v767_v48 }
 0x506   : > { %v2585_v49 = vpop.eup %2584 }
 0x507   : > { %v769_v50 = vsel %vm512_vm6, %v2585_v49, 0.0 }
 0x508   : > { %770 = vadd.xlane.f32.xlu1 %v769_v50 }
 0x50a   : > { %v2587_v36 = vpop.eup %2586 }
 0x50b   : > { %v772_v51 = vsel %vm512_vm6, %v2587_v36, 0.0 }
 0x50c   : > { %773 = vadd.xlane.f32.xlu0 %v772_v51  ;;  %v295_v51 = vld [vmem:[%s2719_s10] sm:$0xff] }
 0x50e   : > { %v2589_v52 = vpop.eup %2588 }
 0x50f   : > { %v775_v53 = vsel %vm512_vm6, %v2589_v52, 0.0 }
 0x510   : > { %776 = vadd.xlane.f32.xlu1 %v775_v53  ;;  %v2305_v53 = vcombine.high %v295_v51, %v295_v51 }
 0x521   : > { %788 = vrot.lane.b32.xlu1 %v2759_v20, %s2655_s30 }
 0x522   : > { %2531 = vrot.lane.b32.xlu0 %v2752_v18, %s2655_s30 }
 0x595   : > { %v771_v54 = vpop.xlane.xlu1 %770 }
 0x596   : > { %2590 = vrcp.f32 %v771_v54  ;;  %v2304_v54 = vcombine.low %v295_v51, %v295_v51  ;;  %v2956_v51 = vld [vmem:[%s2719_s10 + $0x50] sm:$0xff] }
 0x599   : > { %v774_v55 = vpop.xlane.xlu0 %773 }
 0x59a   : > { %2592 = vrcp.f32 %v774_v55 }
 0x59d   : > { %v777_v56 = vpop.xlane.xlu1 %776  ;;  %v2532_v57 = vpop.permute.xlu0 %2531 }
 0x59e   : > { %v2534_v58 = vunpack.i.h.bf16 %v2532_v57  ;;  %v2533_v59 = vunpack.i.l.bf16 %v2532_v57  ;;  %2594 = vrcp.f32 %v777_v56  ;;  %v1130_v57 = vsel %vm355_vm1, %v2304_v54, 0 }
 0x5a0   : > { %v2485_v60 = vpack.c.bf16 %v2534_v58, %v2533_v59  ;;  %v2591_v61 = vpop.eup %2590  ;;  %v2657_v59 = vmov 0  }
 0x5a1   : > { %v781_v62 = vmul.f32 %v2591_v61, %v2585_v49  ;;  %v789_v63 = vpop.permute.xlu1 %788 }
 0x5a2   : > { %2486 = vmatpush3.bf16.msra.mxu1 %v2485_v60  ;;  %v297_v60 = vld [vmem:[%s2719_s10 + $0x10] sm:$0xff] }
 0x5a3   : > { %2456 = vmatprep.subr.mxu1 %v2651_v19  ;;  %v2309_v61 = vcombine.high %v297_v60, %v297_v60 }
 0x5a4   : > { %v2593_v20 = vpop.eup %2592 }
 0x5a5   : > { %v782_v18 = vmul.f32 %v2593_v20, %v2587_v36 }
 0x5a6   : > { %2457 = vmatpush3.msra.mxu1 %v789_v63 }
 0x5a7   : > { %2459 = vmatmul.mubr.msk.f32.vlgmr.msra.gmra.mrb[10].mxu1 %vm512_vm6, %v781_v62  ;;  %2320 = vmatprep.subr.msk.bf16.mxu1 %vm355_vm1, %v2305_v53  ;;  %v298_v62 = vld [vmem:[%s2719_s10 + $0x18] sm:$0xff]  ;;  %v2350_v53 = vcombine.high %v2956_v51, %v2956_v51 }
 0x5a8   : > { %2461 = vmatprep.mubr.msk.f32.mxu1 %vm2650_vm3, %v2651_v19  ;;  %v2595_v0 = vpop.eup %2594  ;;  %1178 = vmatpush1.bf16.msra.mxu1 %v1130_v57  ;;  %v2311_v63 = vcombine.high %v298_v62, %v298_v62  ;;  %v311_v57 = vld [vmem:[%s2719_s10 + $0x80] sm:$0x11] }
 0x5a9   : > { %v783_v1 = vmul.f32 %v2595_v0, %v2589_v52  ;;  %v296_v52 = vld [vmem:[%s2719_s10 + $0x8] sm:$0xff]  ;;  %2326 = vmatprep.subr.msk.bf16.mxu1 %vm355_vm1, %v2309_v61 }
 0x5aa   : > { %v2307_v55 = vcombine.high %v296_v52, %v296_v52  ;;  %v2306_v56 = vcombine.low %v296_v52, %v296_v52  ;;  %v2959_v52 = vld [vmem:[%s2719_s10 + $0x58] sm:$0xff] }
 0x5ab   : > { %2462 = vmatmul.mubr.msk.f32.gmra.mrb[12].mxu1 %vm512_vm6, %v782_v18  ;;  %v2352_v54 = vcombine.high %v2959_v52, %v2959_v52 }
 0x5ac   : > { %2464 = vmatprep.mubr.msk.f32.mxu1 %vm2650_vm3, %v2651_v19  ;;  %2323 = vmatprep.subr.msk.bf16.mxu0 %vm355_vm1, %v2307_v55  ;;  %v1136_v58 = vsel %vm355_vm1, %v2306_v56, 0  ;;  %v1019_v55 = vlaneseq }
 0x5ae   : > { %v1020_v56 = vshrl.u32 %v1019_v55, 7 }
 0x5af   : > { %2465 = vmatmul.mubr.msk.f32.gmra.mrb[14].mxu1 %vm512_vm6, %v783_v1 }
 0x5b0   : > { %1209 = vmatprep.mubr.bf16.mxu1 %v2657_v59 }
 0x67a   : > { %v868_v6 = vpop.f32.mrb[10].mxu1 }
 0x67b   : > { %v2460_v7 = vpop.f32.mrb[11].mxu1 }
 0x67e   : > { %v873_v9 = vpop.f32.mrb[12].mxu1 }
 0x67f   : > { %v2535_v10 = vpack.i.bf16 %v873_v9, %v868_v6  ;;  %v2463_v11 = vpop.f32.mrb[13].mxu1 }
 0x680   : > { %v2302_v11 = vld [vmem:[%s2714_s7 + $0x3] ss:$0 sm:$0xff] }
 0x681   : > { %2536 = vrot.lane.b32.xlu1 %v2535_v10, %s2656_s8 }
 0x682   : > { %v878_v12 = vpop.f32.mrb[14].mxu1 }
 0x683   : > { %889 = vrot.lane.b32.xlu0 %v878_v12, %s2656_s8  ;;  %v2466_v19 = vpop.f32.mrb[15].mxu1 }
 0x6f3   : > { %v2537_v13 = vpop.permute.xlu1 %2536 }
 0x6f4   : > { %v2539_v14 = vunpack.i.h.bf16 %v2537_v13  ;;  %v2538_v15 = vunpack.i.l.bf16 %v2537_v13 }
 0x6f5   : > { %v890_v16 = vpop.permute.xlu0 %889 }
 0x6f6   : > { %v895_v17 = vsel %vm416_vm4, %v2841_v23, %v2539_v14  ;;  %v894_v22 = vsel %vm416_vm4, %v2839_v21, %v2538_v15  ;;  %v896_v24 = vsel %vm416_vm4, %v2843_v25, %v890_v16  ;;  %v2303_v15 = vld [vmem:[%s2714_s7 + $0x4] ss:$0 sm:$0xff] }
 0x6f7   : > { %v897_v26 = vpack.c.bf16 %v895_v17, %v894_v22  ;;  %v898_v28 = vpack.c.bf16 %v896_v24, %v896_v24  ;;  %v2308_v22 = vcombine.low %v297_v60, %v297_v60  ;;  %v2310_v24 = vcombine.low %v298_v62, %v298_v62 }
 0x6f8   : > { %v2967_v60 = vsub.s32 0, %v1020_v56  ;;  %v320_v62 = vunpack.c.h.bf16 %v311_v57 }
 0x6f9   : > { %2469 = vmatprep.mubr.msk.bf16.mxu0 %vm348_vm2, %v897_v26 }
 0x6fa   : > { %2470 = vmatmul.mubr.msk.bf16.vlgmr.msra.gmra.mrb[12].mxu0 %vm348_vm2, %v898_v28 }
 0x6fb   : > { %1229 = vmatpush1.bf16.msra.mxu0 %v1136_v58  ;;  %1260 = vmatprep.mubr.bf16.mxu0 %v2657_v59  ;;  %v312_v58 = vld [vmem:[%s2719_s10 + $0x88] sm:$0x11] }
 0x6fc   : > { %2329 = vmatprep.subr.msk.bf16.mxu0 %vm355_vm1, %v2311_v63  ;;  %v321_v61 = vunpack.c.l.bf16 %v312_v58  ;;  %v322_v63 = vunpack.c.h.bf16 %v312_v58 }
 0x7cd   : > { %v2471_v30 = vpop.f32.mrb[12].mxu0 }
 0x7ce   : > { %v946_v32 = vpop.f32.mrb[13].mxu0  ;;  %v955_v37 = vadd.f32 %v2471_v30, %v2299_v29  ;;  %v299_v30 = vld [vmem:[%s2719_s10 + $0x20] sm:$0xff] }
 0x7cf   : > { %v947_v33 = vadd.f32 %v2299_v29, %v946_v32  ;;  %v2472_v34 = vpop.f32.mrb[14].mxu0  ;;  %v300_v32 = vld [vmem:[%s2719_s10 + $0x28] sm:$0xff] }
 0x7d0   : > { %v949_v35 = vpop.f32.mrb[15].mxu0  ;;  %v962_v40 = vadd.f32 %v955_v37, %v2740_v8  ;;  %v1148_v37 = vsel %vm355_vm1, %v2310_v24, 0 }
 0x7d1   : > { %v950_v23 = vadd.f32 %v2299_v29, %v949_v35  ;;  %v960_v38 = vadd.f32 %v947_v33, %v2732_v4  ;;  %v1142_v35 = vsel %vm355_vm1, %v2308_v22, 0 }
 0x7d2   : > { %v969_v41 = vsel %vm348_vm2, %v962_v40, 0.0 }
 0x7d3   : > { %v963_v21 = vsel %vm348_vm2, %v960_v38, 0.0  ;;  %v961_v25 = vadd.f32 %v950_v23, %v2734_v5  ;;  %v2313_v23 = vcombine.high %v299_v30, %v299_v30 }
 0x7d4   : > { %964 = vadd.xlane.f32.xlu1 %v963_v21 }
 0x7d5   : > { %v966_v39 = vsel %vm348_vm2, %v961_v25, 0.0 }
 0x7d6   : > { %967 = vadd.xlane.f32.xlu0 %v966_v39  ;;  %v2312_v39 = vcombine.low %v299_v30, %v299_v30  ;;  %v314_v30 = vld [vmem:[%s2719_s10 + $0x98] sm:$0x11] }
 0x7da   : > { %970 = vadd.xlane.f32.xlu0 %v969_v41  ;;  %v301_v41 = vld [vmem:[%s2719_s10 + $0x30] sm:$0xff] }
 0x861   : > { %v965_v42 = vpop.xlane.xlu1 %964 }
 0x862   : > { %v973_v27 = vmul.f32 0.125, %v965_v42  ;;  %v302_v42 = vld [vmem:[%s2719_s10 + $0x38] sm:$0xff] }
 0x863   : > { %v968_v43 = vpop.xlane.xlu0 %967 }
 0x864   : > { %v976_v44 = vsub.f32 %v960_v38, %v973_v27  ;;  %v974_v4 = vmul.f32 0.125, %v968_v43  ;;  %v2315_v38 = vcombine.high %v300_v32, %v300_v32  ;;  %v1154_v27 = vsel %vm355_vm1, %v2312_v39, 0  ;;  %v2976_v39 = vld [vmem:[%s2719_s10 + $0x60] sm:$0xff] }
 0x866   : > { %v977_v45 = vsub.f32 %v961_v25, %v974_v4  ;;  %v979_v46 = vmul.f32 %v976_v44, %v976_v44  ;;  %v2319_v4 = vcombine.high %v302_v42, %v302_v42 }
 0x867   : > { %v971_v47 = vpop.xlane.xlu0 %970 }
 0x868   : > { %v975_v5 = vmul.f32 0.125, %v971_v47  ;;  %v982_v31 = vsel %vm348_vm2, %v979_v46, 0.0  ;;  %v980_v48 = vmul.f32 %v977_v45, %v977_v45  ;;  %v2318_v46 = vcombine.low %v302_v42, %v302_v42 }
 0x869   : > { %983 = vadd.xlane.f32.xlu1 %v982_v31  ;;  %v303_v31 = vld [vmem:[%s2719_s10 + $0x40] sm:$0xff] }
 0x86a   : > { %v978_v8 = vsub.f32 %v962_v40, %v975_v5  ;;  %v985_v49 = vsel %vm348_vm2, %v980_v48, 0.0  ;;  %v2314_v40 = vcombine.low %v300_v32, %v300_v32  ;;  %v1172_v5 = vsel %vm355_vm1, %v2318_v46, 0  ;;  %v304_v48 = vld [vmem:[%s2719_s10 + $0x48] sm:$0xff] }
 0x86b   : > { %986 = vadd.xlane.f32.xlu0 %v985_v49  ;;  %v2348_v49 = vcombine.high %v304_v48, %v304_v48 }
 0x86c   : > { %v981_v50 = vmul.f32 %v978_v8, %v978_v8  ;;  %v1160_v43 = vsel %vm355_vm1, %v2314_v40, 0  ;;  %v2979_v40 = vld [vmem:[%s2719_s10 + $0x68] sm:$0xff] }
 0x86e   : > { %v988_v36 = vsel %vm348_vm2, %v981_v50, 0.0  ;;  %v2345_v50 = vcombine.low %v303_v31, %v303_v31 }
 0x86f   : > { %989 = vadd.xlane.f32.xlu1 %v988_v36  ;;  %v2347_v36 = vcombine.low %v304_v48, %v304_v48 }
 0x8f6   : > { %v984_v20 = vpop.xlane.xlu1 %983 }
 0x8f7   : > { %v991_v18 = vmul.f32 0.125, %v984_v20 }
 0x8f8   : > { %v987_v0 = vpop.xlane.xlu0 %986 }
 0x8f9   : > { %v994_v1 = vadd.f32 1e-05, %v991_v18  ;;  %v992_v2 = vmul.f32 0.125, %v987_v0  ;;  %v1030_v18 = vrot.slane %v321_v61, %v2967_v60  ;;  %v1026_v0 = vrot.slane %v320_v62, %v2967_v60 }
 0x8fb   : > { %2596 = vrsqrt.f32 %v994_v1  ;;  %v995_v3 = vadd.f32 1e-05, %v992_v2  ;;  %v1034_v1 = vrot.slane %v322_v63, %v2967_v60 }
 0x8fc   : > { %v990_v6 = vpop.xlane.xlu1 %989 }
 0x8fd   : > { %2598 = vrsqrt.f32 %v995_v3  ;;  %v993_v7 = vmul.f32 0.125, %v990_v6 }
 0x8ff   : > { %v996_v9 = vadd.f32 1e-05, %v993_v7 }
 0x901   : > { %2600 = vrsqrt.f32 %v996_v9 }
 0x905   : > { %v2597_v10 = vpop.eup %2596 }
 0x906   : > { %v1000_v12 = vmul.f32 %v2597_v10, %v976_v44  ;;  %v2317_v44 = vcombine.high %v301_v41, %v301_v41 }
 0x907   : > { %v2599_v19 = vpop.eup %2598 }
 0x908   : > { %v1007_v13 = vmul.f32 %v2302_v11, %v1000_v12  ;;  %v1001_v14 = vmul.f32 %v2599_v19, %v977_v45  ;;  %v2316_v45 = vcombine.low %v301_v41, %v301_v41 }
 0x90a   : > { %v1008_v16 = vmul.f32 %v2302_v11, %v1001_v14  ;;  %v2899_v26 = vadd.f32 %v2303_v15, %v1007_v13  ;;  %v1166_v47 = vsel %vm355_vm1, %v2316_v45, 0 }
 0x90b   : > { %v2601_v17 = vpop.eup %2600 }
 0x90c   : > { %v2901_v28 = vadd.f32 %v2303_v15, %v1008_v16  ;;  %v1002_v29 = vmul.f32 %v2601_v17, %v978_v8  ;;  %v2346_v8 = vcombine.high %v303_v31, %v303_v31 }
 0x90e   : > { %v1017_v33 = vpack.c.bf16 %v2901_v28, %v2899_v26  ;;  %v1009_v34 = vmul.f32 %v2302_v11, %v1002_v29  ;;  %v313_v29 = vld [vmem:[%s2719_s10 + $0x90] sm:$0x11] }
 0x910   : > { %2321 = vmatmul.mubr.msk.bf16.vlgmr.msra.gmra.mrb[16].mxu1 %vm348_vm2, %v1017_v33  ;;  %2324 = vmatmul.mubr.msk.bf16.vlgmr.msra.gmra.mrb[16].mxu0 %vm348_vm2, %v1017_v33  ;;  %v2913_v21 = vadd.f32 %v2303_v15, %v1009_v34 }
 0x911   : > { %1219 = vmatprep.mubr.bf16.mxu1 %v2657_v59  ;;  %1270 = vmatprep.mubr.bf16.mxu0 %v2657_v59 }
 0x912   : > { %1280 = vmatpush1.bf16.msra.mxu1 %v1142_v35  ;;  %1331 = vmatpush1.bf16.msra.mxu0 %v1148_v37  ;;  %v1018_v25 = vpack.c.bf16 %v2913_v21, %v2913_v21 }
 0x913   : > { %2332 = vmatprep.subr.msk.bf16.mxu1 %vm355_vm1, %v2313_v23  ;;  %2335 = vmatprep.subr.msk.bf16.mxu0 %vm355_vm1, %v2315_v38 }
 0x918   : > { %2322 = vmatmul.mubr.msk.bf16.gmra.mrb[20].mxu1 %vm348_vm2, %v1018_v25  ;;  %2325 = vmatmul.mubr.msk.bf16.gmra.mrb[20].mxu0 %vm348_vm2, %v1018_v25 }
 0x919   : > { %1311 = vmatprep.mubr.bf16.mxu1 %v2657_v59  ;;  %1362 = vmatprep.mubr.bf16.mxu0 %v2657_v59 }
 0x920   : > { %2327 = vmatmul.mubr.msk.bf16.vlgmr.msra.gmra.mrb[24].mxu1 %vm348_vm2, %v1017_v33  ;;  %2330 = vmatmul.mubr.msk.bf16.vlgmr.msra.gmra.mrb[24].mxu0 %vm348_vm2, %v1017_v33 }
 0x921   : > { %1321 = vmatprep.mubr.bf16.mxu1 %v2657_v59  ;;  %1372 = vmatprep.mubr.bf16.mxu0 %v2657_v59 }
 0x922   : > { %1382 = vmatpush1.bf16.msra.mxu1 %v1154_v27  ;;  %1433 = vmatpush1.bf16.msra.mxu0 %v1160_v43  ;;  %v323_v27 = vunpack.c.l.bf16 %v313_v29  ;;  %v325_v43 = vunpack.c.l.bf16 %v314_v30 }
 0x923   : > { %2338 = vmatprep.subr.msk.bf16.mxu1 %vm355_vm1, %v2317_v44  ;;  %2341 = vmatprep.subr.msk.bf16.mxu0 %vm355_vm1, %v2319_v4 }
 0x928   : > { %2328 = vmatmul.mubr.msk.bf16.gmra.mrb[28].mxu1 %vm348_vm2, %v1018_v25  ;;  %2331 = vmatmul.mubr.msk.bf16.gmra.mrb[28].mxu0 %vm348_vm2, %v1018_v25 }
 0x929   : > { %1413 = vmatprep.mubr.bf16.mxu1 %v2657_v59  ;;  %1464 = vmatprep.mubr.bf16.mxu0 %v2657_v59 }
 0x930   : > { %2333 = vmatmul.mubr.msk.bf16.vlgmr.msra.gmra.mrb[32].mxu1 %vm348_vm2, %v1017_v33  ;;  %2336 = vmatmul.mubr.msk.bf16.vlgmr.msra.gmra.mrb[32].mxu0 %vm348_vm2, %v1017_v33 }
 0x931   : > { %1423 = vmatprep.mubr.bf16.mxu1 %v2657_v59  ;;  %1474 = vmatprep.mubr.bf16.mxu0 %v2657_v59 }
 0x932   : > { %1484 = vmatpush1.bf16.msra.mxu1 %v1166_v47  ;;  %1535 = vmatpush1.bf16.msra.mxu0 %v1172_v5  ;;  %v2349_v47 = vcombine.low %v2956_v51, %v2956_v51  ;;  %v2351_v5 = vcombine.low %v2959_v52, %v2959_v52  ;;  %v324_v51 = vunpack.c.h.bf16 %v313_v29 }
 0x933   : > { %1725 = vmatprep.subr.bf16.mxu1 %v2346_v8  ;;  %1773 = vmatprep.subr.bf16.mxu0 %v2348_v49 }
 0x938   : > { %2334 = vmatmul.mubr.msk.bf16.gmra.mrb[36].mxu1 %vm348_vm2, %v1018_v25  ;;  %2337 = vmatmul.mubr.msk.bf16.gmra.mrb[36].mxu0 %vm348_vm2, %v1018_v25 }
 0x939   : > { %1515 = vmatprep.mubr.bf16.mxu1 %v2657_v59  ;;  %1566 = vmatprep.mubr.bf16.mxu0 %v2657_v59 }
 0x940   : > { %2339 = vmatmul.mubr.msk.bf16.vlgmr.msra.gmra.mrb[40].mxu1 %vm348_vm2, %v1017_v33  ;;  %2342 = vmatmul.mubr.msk.bf16.vlgmr.msra.gmra.mrb[40].mxu0 %vm348_vm2, %v1017_v33 }
 0x941   : > { %1525 = vmatprep.mubr.bf16.mxu1 %v2657_v59  ;;  %1576 = vmatprep.mubr.bf16.mxu0 %v2657_v59  ;;  %v319_v59 = vunpack.c.l.bf16 %v311_v57  ;;  %v326_v57 = vunpack.c.h.bf16 %v314_v30 }
 0x942   : > { %1726 = vmatpush1.bf16.xpose.msra.mxu1 %v2345_v50  ;;  %1774 = vmatpush1.bf16.xpose.msra.mxu0 %v2347_v36  ;;  %v2354_v50 = vcombine.high %v2976_v39, %v2976_v39  ;;  %v2356_v36 = vcombine.high %v2979_v40, %v2979_v40 }
 0x943   : > { %1821 = vmatprep.subr.bf16.mxu1 %v2350_v53  ;;  %1869 = vmatprep.subr.bf16.mxu0 %v2352_v54  ;;  %v1022_v20 = vrot.slane %v319_v59, %v2967_v60 }
 0x948   : > { %2340 = vmatmul.mubr.msk.bf16.gmra.mrb[44].mxu1 %vm348_vm2, %v1018_v25  ;;  %2343 = vmatmul.mubr.msk.bf16.gmra.mrb[44].mxu0 %vm348_vm2, %v1018_v25 }
 0x9e3   : > { %v1211_v2 = vpop.f32.mrb[16].mxu1  ;;  %v1262_v3 = vpop.f32.mrb[16].mxu0 }
 0x9e4   : > { %v1212_v6 = vadd.f32 %v1211_v2, %v1022_v20  ;;  %v1263_v7 = vadd.f32 %v1262_v3, %v1030_v18  ;;  %v1213_v9 = vpop.f32.mrb[17].mxu1  ;;  %v1264_v10 = vpop.f32.mrb[17].mxu0  ;;  %v1042_v2 = vrot.slane %v324_v51, %v2967_v60  ;;  %v1050_v3 = vrot.slane %v326_v57, %v2967_v60 }
 0x9e5   : > { %v1214_v11 = vadd.f32 %v1213_v9, %v1026_v0  ;;  %v1265_v12 = vadd.f32 %v1264_v10, %v1034_v1  ;;  %v1215_v19 = vpop.f32.mrb[18].mxu1  ;;  %v1266_v13 = vpop.f32.mrb[18].mxu0 }
 0x9e6   : > { %v1216_v14 = vadd.f32 %v1215_v19, %v1022_v20  ;;  %v1267_v15 = vadd.f32 %v1266_v13, %v1030_v18  ;;  %v1217_v16 = vpop.f32.mrb[19].mxu1  ;;  %v1268_v17 = vpop.f32.mrb[19].mxu0  ;;  %v1585_v32 = vmax.f32 %v1212_v6, 0.0  ;;  %v1587_v33 = vmax.f32 %v1263_v7, 0.0 }
 0x9e7   : > { %v1218_v22 = vadd.f32 %v1217_v16, %v1026_v0  ;;  %v1269_v24 = vadd.f32 %v1268_v17, %v1034_v1  ;;  %v1586_v37 = vmax.f32 %v1214_v11, 0.0  ;;  %v1588_v23 = vmax.f32 %v1265_v12, 0.0 }
 0x9e8   : > { %v1601_v34 = vmax.f32 %v1216_v14, 0.0  ;;  %v1603_v35 = vmax.f32 %v1267_v15, 0.0 }
 0x9e9   : > { %v1602_v38 = vmax.f32 %v1218_v22, 0.0  ;;  %v1604_v25 = vmax.f32 %v1269_v24, 0.0 }
 0x9ea   : > { %v1633_v41 = vpack.c.bf16 %v1601_v34, %v1585_v32  ;;  %v1635_v42 = vpack.c.bf16 %v1603_v35, %v1587_v33  ;;  %v315_v34 = vld [vmem:[%s2719_s10 + $0xa0] sm:$0x11]  ;;  %v316_v35 = vld [vmem:[%s2719_s10 + $0xa8] sm:$0x11] }
 0x9eb   : > { %v1634_v44 = vpack.c.bf16 %v1602_v38, %v1586_v37  ;;  %v1636_v4 = vpack.c.bf16 %v1604_v25, %v1588_v23  ;;  %v1221_v45 = vpop.f32.mrb[20].mxu1  ;;  %v1272_v46 = vpop.f32.mrb[20].mxu0 }
 0x9ec   : > { %v1222_v31 = vadd.f32 %v1221_v45, %v1022_v20  ;;  %v1273_v48 = vadd.f32 %v1272_v46, %v1030_v18  ;;  %v1223_v8 = vpop.f32.mrb[21].mxu1  ;;  %v1274_v49 = vpop.f32.mrb[21].mxu0  ;;  %v1038_v20 = vrot.slane %v323_v27, %v2967_v60  ;;  %v1046_v18 = vrot.slane %v325_v43, %v2967_v60 }
 0x9ed   : > { %v1224_v53 = vadd.f32 %v1223_v8, %v1026_v0  ;;  %v1275_v54 = vadd.f32 %v1274_v49, %v1034_v1  ;;  %v1225_v55 = vpop.f32.mrb[22].mxu1  ;;  %v1276_v56 = vpop.f32.mrb[22].mxu0  ;;  %1757 = vmatprep.mubr.bf16.mxu1 %v1634_v44  ;;  %1805 = vmatprep.mubr.bf16.mxu0 %v1636_v4  ;;  %v2996_v44 = vld [vmem:[%s2719_s10 + $0x70] sm:$0xff]  ;;  %v2999_v4 = vld [vmem:[%s2719_s10 + $0x78] sm:$0xff] }
 0x9ee   : > { %v1226_v58 = vpop.f32.mrb[23].mxu1  ;;  %v1277_v52 = vpop.f32.mrb[23].mxu0  ;;  %1758 = vmatmul.mubr.bf16.vlgmr.msra.gmra.mrb[48].mxu1 %v1633_v41  ;;  %1806 = vmatmul.mubr.bf16.vlgmr.msra.gmra.mrb[48].mxu0 %v1635_v42  ;;  %v1617_v62 = vmax.f32 %v1222_v31, 0.0  ;;  %v1619_v63 = vmax.f32 %v1273_v48, 0.0  ;;  %v2358_v51 = vcombine.high %v2996_v44, %v2996_v44  ;;  %v2360_v57 = vcombine.high %v2999_v4, %v2999_v4 }
 0x9ef   : > { %v1618_v59 = vmax.f32 %v1224_v53, 0.0  ;;  %v1620_v61 = vmax.f32 %v1275_v54, 0.0  ;;  %1822 = vmatpush1.bf16.xpose.msra.mxu1 %v2349_v47  ;;  %1870 = vmatpush1.bf16.xpose.msra.mxu0 %v2351_v5  ;;  %v327_v47 = vunpack.c.l.bf16 %v315_v34  ;;  %v329_v5 = vunpack.c.l.bf16 %v316_v35 }
 0x9f0   : > { %1917 = vmatprep.subr.bf16.mxu1 %v2354_v50  ;;  %1965 = vmatprep.subr.bf16.mxu0 %v2356_v36  ;;  %v1649_v9 = vpack.c.bf16 %v1617_v62, %v1617_v62  ;;  %v1651_v10 = vpack.c.bf16 %v1619_v63, %v1619_v63  ;;  %v2353_v50 = vcombine.low %v2976_v39, %v2976_v39  ;;  %v328_v39 = vunpack.c.h.bf16 %v315_v34 }
 0x9f1   : > { %v1650_v0 = vpack.c.bf16 %v1618_v59, %v1618_v59  ;;  %v1652_v1 = vpack.c.bf16 %v1620_v61, %v1620_v61  ;;  %v2355_v36 = vcombine.low %v2979_v40, %v2979_v40  ;;  %v330_v62 = vunpack.c.h.bf16 %v316_v35 }
 0x9f3   : > { %v1313_v6 = vpop.f32.mrb[24].mxu1  ;;  %v1364_v7 = vpop.f32.mrb[24].mxu0  ;;  %1765 = vmatprep.mubr.bf16.mxu1 %v1650_v0  ;;  %1813 = vmatprep.mubr.bf16.mxu0 %v1652_v1 }
 0x9f4   : > { %v1314_v11 = vadd.f32 %v1313_v6, %v1038_v20  ;;  %v1365_v12 = vadd.f32 %v1364_v7, %v1046_v18  ;;  %v1315_v19 = vpop.f32.mrb[25].mxu1  ;;  %v1366_v13 = vpop.f32.mrb[25].mxu0  ;;  %v1054_v6 = vrot.slane %v327_v47, %v2967_v60 }
 0x9f5   : > { %v1316_v14 = vadd.f32 %v1315_v19, %v1042_v2  ;;  %v1367_v15 = vadd.f32 %v1366_v13, %v1050_v3  ;;  %v1317_v16 = vpop.f32.mrb[26].mxu1  ;;  %v1368_v17 = vpop.f32.mrb[26].mxu0 }
 0x9f6   : > { %v1318_v22 = vadd.f32 %v1317_v16, %v1038_v20  ;;  %v1369_v24 = vadd.f32 %v1368_v17, %v1046_v18  ;;  %v1319_v29 = vpop.f32.mrb[27].mxu1  ;;  %v1370_v30 = vpop.f32.mrb[27].mxu0  ;;  %1766 = vmatmul.mubr.bf16.gmra.mrb[52].mxu1 %v1649_v9  ;;  %1814 = vmatmul.mubr.bf16.gmra.mrb[52].mxu0 %v1651_v10  ;;  %v1589_v37 = vmax.f32 %v1314_v11, 0.0  ;;  %v1591_v23 = vmax.f32 %v1365_v12, 0.0 }
 0x9f7   : > { %v1320_v32 = vadd.f32 %v1319_v29, %v1042_v2  ;;  %v1371_v33 = vadd.f32 %v1370_v30, %v1050_v3  ;;  %v1590_v41 = vmax.f32 %v1316_v14, 0.0  ;;  %v1592_v42 = vmax.f32 %v1367_v15, 0.0 }
 0x9f8   : > { %v1605_v38 = vmax.f32 %v1318_v22, 0.0  ;;  %v1607_v25 = vmax.f32 %v1369_v24, 0.0  ;;  %v1058_v9 = vrot.slane %v328_v39, %v2967_v60  ;;  %v1066_v10 = vrot.slane %v330_v62, %v2967_v60 }
 0x9f9   : > { %v1606_v27 = vmax.f32 %v1320_v32, 0.0  ;;  %v1608_v43 = vmax.f32 %v1371_v33, 0.0 }
 0x9fa   : > { %v1637_v45 = vpack.c.bf16 %v1605_v38, %v1589_v37  ;;  %v1639_v46 = vpack.c.bf16 %v1607_v25, %v1591_v23 }
 0x9fb   : > { %v1638_v31 = vpack.c.bf16 %v1606_v27, %v1590_v41  ;;  %v1640_v48 = vpack.c.bf16 %v1608_v43, %v1592_v42  ;;  %v1323_v8 = vpop.f32.mrb[28].mxu1  ;;  %v1374_v49 = vpop.f32.mrb[28].mxu0  ;;  %v317_v27 = vld [vmem:[%s2719_s10 + $0xb0] sm:$0x11] }
 0x9fc   : > { %v1324_v53 = vadd.f32 %v1323_v8, %v1038_v20  ;;  %v1375_v54 = vadd.f32 %v1374_v49, %v1046_v18  ;;  %v1325_v55 = vpop.f32.mrb[29].mxu1  ;;  %v1376_v56 = vpop.f32.mrb[29].mxu0 }
 0x9fd   : > { %v1326_v58 = vadd.f32 %v1325_v55, %v1042_v2  ;;  %v1377_v52 = vadd.f32 %v1376_v56, %v1050_v3  ;;  %v1327_v59 = vpop.f32.mrb[30].mxu1  ;;  %v1378_v61 = vpop.f32.mrb[30].mxu0  ;;  %1853 = vmatprep.mubr.bf16.mxu1 %v1638_v31  ;;  %1901 = vmatprep.mubr.bf16.mxu0 %v1640_v48  ;;  %v1062_v2 = vrot.slane %v329_v5, %v2967_v60  ;;  %v318_v5 = vld [vmem:[%s2719_s10 + $0xb8] sm:$0x11] }
 0x9fe   : > { %v1328_v63 = vpop.f32.mrb[31].mxu1  ;;  %v1379_v40 = vpop.f32.mrb[31].mxu0  ;;  %1854 = vmatmul.mubr.bf16.vlgmr.msra.gmra.mrb[56].mxu1 %v1637_v45  ;;  %1902 = vmatmul.mubr.bf16.vlgmr.msra.gmra.mrb[56].mxu0 %v1639_v46  ;;  %v1621_v0 = vmax.f32 %v1324_v53, 0.0  ;;  %v1623_v1 = vmax.f32 %v1375_v54, 0.0  ;;  %v2357_v53 = vcombine.low %v2996_v44, %v2996_v44  ;;  %v2359_v54 = vcombine.low %v2999_v4, %v2999_v4 }
 0x9ff   : > { %v1622_v20 = vmax.f32 %v1326_v58, 0.0  ;;  %v1624_v18 = vmax.f32 %v1377_v52, 0.0  ;;  %1918 = vmatpush1.bf16.xpose.msra.mxu1 %v2353_v50  ;;  %1966 = vmatpush1.bf16.xpose.msra.mxu0 %v2355_v36  ;;  %v331_v58 = vunpack.c.l.bf16 %v317_v27  ;;  %v333_v52 = vunpack.c.l.bf16 %v318_v5 }
 0xa00   : > { %2013 = vmatprep.subr.bf16.mxu1 %v2358_v51  ;;  %2061 = vmatprep.subr.bf16.mxu0 %v2360_v57  ;;  %v1653_v19 = vpack.c.bf16 %v1621_v0, %v1621_v0  ;;  %v1655_v13 = vpack.c.bf16 %v1623_v1, %v1623_v1  ;;  %v332_v63 = vunpack.c.h.bf16 %v317_v27  ;;  %v334_v40 = vunpack.c.h.bf16 %v318_v5 }
 0xa01   : > { %v1654_v3 = vpack.c.bf16 %v1622_v20, %v1622_v20  ;;  %v1656_v7 = vpack.c.bf16 %v1624_v18, %v1624_v18 }
 0xa03   : > { %v1415_v11 = vpop.f32.mrb[32].mxu1  ;;  %v1466_v12 = vpop.f32.mrb[32].mxu0  ;;  %1861 = vmatprep.mubr.bf16.mxu1 %v1654_v3  ;;  %1909 = vmatprep.mubr.bf16.mxu0 %v1656_v7 }
 0xa04   : > { %v1416_v14 = vadd.f32 %v1415_v11, %v1054_v6  ;;  %v1467_v15 = vadd.f32 %v1466_v12, %v1062_v2  ;;  %v1417_v16 = vpop.f32.mrb[33].mxu1  ;;  %v1468_v17 = vpop.f32.mrb[33].mxu0 }
 0xa05   : > { %v1418_v22 = vadd.f32 %v1417_v16, %v1058_v9  ;;  %v1469_v24 = vadd.f32 %v1468_v17, %v1066_v10  ;;  %v1419_v29 = vpop.f32.mrb[34].mxu1  ;;  %v1470_v30 = vpop.f32.mrb[34].mxu0 }
 0xa06   : > { %v1420_v32 = vadd.f32 %v1419_v29, %v1054_v6  ;;  %v1471_v33 = vadd.f32 %v1470_v30, %v1062_v2  ;;  %v1421_v34 = vpop.f32.mrb[35].mxu1  ;;  %v1472_v35 = vpop.f32.mrb[35].mxu0  ;;  %1862 = vmatmul.mubr.bf16.gmra.mrb[60].mxu1 %v1653_v19  ;;  %1910 = vmatmul.mubr.bf16.gmra.mrb[60].mxu0 %v1655_v13  ;;  %v1593_v38 = vmax.f32 %v1416_v14, 0.0  ;;  %v1595_v25 = vmax.f32 %v1467_v15, 0.0 }
 0xa07   : > { %v1422_v37 = vadd.f32 %v1421_v34, %v1058_v9  ;;  %v1473_v23 = vadd.f32 %v1472_v35, %v1066_v10  ;;  %v1594_v43 = vmax.f32 %v1418_v22, 0.0  ;;  %v1596_v45 = vmax.f32 %v1469_v24, 0.0 }
 0xa08   : > { %v1609_v41 = vmax.f32 %v1420_v32, 0.0  ;;  %v1611_v42 = vmax.f32 %v1471_v33, 0.0 }
 0xa09   : > { %v1610_v46 = vmax.f32 %v1422_v37, 0.0  ;;  %v1612_v47 = vmax.f32 %v1473_v23, 0.0 }
 0xa0a   : > { %v1641_v31 = vpack.c.bf16 %v1609_v41, %v1593_v38  ;;  %v1643_v48 = vpack.c.bf16 %v1611_v42, %v1595_v25 }
 0xa0b   : > { %v1642_v8 = vpack.c.bf16 %v1610_v46, %v1594_v43  ;;  %v1644_v49 = vpack.c.bf16 %v1612_v47, %v1596_v45  ;;  %v1425_v50 = vpop.f32.mrb[36].mxu1  ;;  %v1476_v36 = vpop.f32.mrb[36].mxu0 }
 0xa0c   : > { %v1426_v55 = vadd.f32 %v1425_v50, %v1054_v6  ;;  %v1477_v56 = vadd.f32 %v1476_v36, %v1062_v2  ;;  %v1427_v51 = vpop.f32.mrb[37].mxu1  ;;  %v1478_v57 = vpop.f32.mrb[37].mxu0  ;;  %v1070_v6 = vrot.slane %v331_v58, %v2967_v60  ;;  %v1078_v2 = vrot.slane %v333_v52, %v2967_v60 }
 0xa0d   : > { %v1428_v59 = vadd.f32 %v1427_v51, %v1058_v9  ;;  %v1479_v61 = vadd.f32 %v1478_v57, %v1066_v10  ;;  %v1429_v39 = vpop.f32.mrb[38].mxu1  ;;  %v1480_v62 = vpop.f32.mrb[38].mxu0  ;;  %1949 = vmatprep.mubr.bf16.mxu1 %v1642_v8  ;;  %1997 = vmatprep.mubr.bf16.mxu0 %v1644_v49  ;;  %v1074_v9 = vrot.slane %v332_v63, %v2967_v60 }
 0xa0e   : > { %v1430_v20 = vpop.f32.mrb[39].mxu1  ;;  %v1481_v18 = vpop.f32.mrb[39].mxu0  ;;  %1950 = vmatmul.mubr.bf16.vlgmr.msra.gmra.mrb[64].mxu1 %v1641_v31  ;;  %1998 = vmatmul.mubr.bf16.vlgmr.msra.gmra.mrb[64].mxu0 %v1643_v48  ;;  %v1625_v0 = vmax.f32 %v1426_v55, 0.0  ;;  %v1627_v1 = vmax.f32 %v1477_v56, 0.0  ;;  %v1082_v10 = vrot.slane %v334_v40, %v2967_v60 }
 0xa0f   : > { %v1626_v44 = vmax.f32 %v1428_v59, 0.0  ;;  %v1628_v4 = vmax.f32 %v1479_v61, 0.0  ;;  %2014 = vmatpush1.bf16.xpose.msra.mxu1 %v2357_v53  ;;  %2062 = vmatpush1.bf16.xpose.msra.mxu0 %v2359_v54  ;;  %v2344_v18 = vld [vmem:[%s2714_s7 + $0x2] ss:$0 sm:$0xff] }
 0xa10   : > { %v1657_v19 = vpack.c.bf16 %v1625_v0, %v1625_v0  ;;  %v1659_v13 = vpack.c.bf16 %v1627_v1, %v1627_v1 }
 0xa11   : > { %v1658_v3 = vpack.c.bf16 %v1626_v44, %v1626_v44  ;;  %v1660_v7 = vpack.c.bf16 %v1628_v4, %v1628_v4 }
 0xa13   : > { %v1517_v11 = vpop.f32.mrb[40].mxu1  ;;  %v1568_v12 = vpop.f32.mrb[40].mxu0  ;;  %1957 = vmatprep.mubr.bf16.mxu1 %v1658_v3  ;;  %2005 = vmatprep.mubr.bf16.mxu0 %v1660_v7 }
 0xa14   : > { %v1518_v14 = vadd.f32 %v1517_v11, %v1070_v6  ;;  %v1569_v15 = vadd.f32 %v1568_v12, %v1078_v2  ;;  %v1519_v16 = vpop.f32.mrb[41].mxu1  ;;  %v1570_v17 = vpop.f32.mrb[41].mxu0 }
 0xa15   : > { %v1520_v22 = vadd.f32 %v1519_v16, %v1074_v9  ;;  %v1571_v24 = vadd.f32 %v1570_v17, %v1082_v10  ;;  %v1521_v29 = vpop.f32.mrb[42].mxu1  ;;  %v1572_v30 = vpop.f32.mrb[42].mxu0 }
 0xa16   : > { %v1522_v32 = vadd.f32 %v1521_v29, %v1070_v6  ;;  %v1573_v33 = vadd.f32 %v1572_v30, %v1078_v2  ;;  %v1523_v34 = vpop.f32.mrb[43].mxu1  ;;  %v1574_v35 = vpop.f32.mrb[43].mxu0  ;;  %1958 = vmatmul.mubr.bf16.gmra.mrb[68].mxu1 %v1657_v19  ;;  %2006 = vmatmul.mubr.bf16.gmra.mrb[68].mxu0 %v1659_v13  ;;  %v1597_v23 = vmax.f32 %v1518_v14, 0.0  ;;  %v1599_v38 = vmax.f32 %v1569_v15, 0.0 }
 0xa17   : > { %v1524_v60 = vadd.f32 %v1523_v34, %v1074_v9  ;;  %v1575_v37 = vadd.f32 %v1574_v35, %v1082_v10  ;;  %v1598_v42 = vmax.f32 %v1520_v22, 0.0  ;;  %v1600_v27 = vmax.f32 %v1571_v24, 0.0 }
 0xa18   : > { %v1613_v25 = vmax.f32 %v1522_v32, 0.0  ;;  %v1615_v41 = vmax.f32 %v1573_v33, 0.0 }
 0xa19   : > { %v1614_v43 = vmax.f32 %v1524_v60, 0.0  ;;  %v1616_v45 = vmax.f32 %v1575_v37, 0.0 }
 0xa1a   : > { %v1645_v46 = vpack.c.bf16 %v1613_v25, %v1597_v23  ;;  %v1647_v47 = vpack.c.bf16 %v1615_v41, %v1599_v38 }
 0xa1b   : > { %v1646_v5 = vpack.c.bf16 %v1614_v43, %v1598_v42  ;;  %v1648_v31 = vpack.c.bf16 %v1616_v45, %v1600_v27  ;;  %v1527_v48 = vpop.f32.mrb[44].mxu1  ;;  %v1578_v8 = vpop.f32.mrb[44].mxu0 }
 0xa1c   : > { %v1528_v49 = vadd.f32 %v1527_v48, %v1070_v6  ;;  %v1579_v50 = vadd.f32 %v1578_v8, %v1078_v2  ;;  %v1529_v36 = vpop.f32.mrb[45].mxu1  ;;  %v1580_v53 = vpop.f32.mrb[45].mxu0 }
 0xa1d   : > { %v1530_v54 = vadd.f32 %v1529_v36, %v1074_v9  ;;  %v1581_v55 = vadd.f32 %v1580_v53, %v1082_v10  ;;  %v1531_v56 = vpop.f32.mrb[46].mxu1  ;;  %v1582_v51 = vpop.f32.mrb[46].mxu0  ;;  %2045 = vmatprep.mubr.bf16.mxu1 %v1646_v5  ;;  %2093 = vmatprep.mubr.bf16.mxu0 %v1648_v31 }
 0xa1e   : > { %v1532_v57 = vpop.f32.mrb[47].mxu1  ;;  %v1583_v58 = vpop.f32.mrb[47].mxu0  ;;  %2046 = vmatmul.mubr.bf16.vlgmr.msra.gmra.mrb[72].mxu1 %v1645_v46  ;;  %2094 = vmatmul.mubr.bf16.vlgmr.msra.gmra.mrb[72].mxu0 %v1647_v47  ;;  %v1629_v61 = vmax.f32 %v1528_v49, 0.0  ;;  %v1631_v39 = vmax.f32 %v1579_v50, 0.0 }
 0xa1f   : > { %v1630_v52 = vmax.f32 %v1530_v54, 0.0  ;;  %v1632_v59 = vmax.f32 %v1581_v55, 0.0 }
 0xa20   : > { %v1661_v40 = vpack.c.bf16 %v1629_v61, %v1629_v61  ;;  %v1663_v20 = vpack.c.bf16 %v1631_v39, %v1631_v39 }
 0xa21   : > { %v1662_v62 = vpack.c.bf16 %v1630_v52, %v1630_v52  ;;  %v1664_v63 = vpack.c.bf16 %v1632_v59, %v1632_v59 }
 0xa23   : > { %2053 = vmatprep.mubr.bf16.mxu1 %v1662_v62  ;;  %2101 = vmatprep.mubr.bf16.mxu0 %v1664_v63 }
 0xa26   : > { %2054 = vmatmul.mubr.bf16.gmra.mrb[76].mxu1 %v1661_v40  ;;  %2102 = vmatmul.mubr.bf16.gmra.mrb[76].mxu0 %v1663_v20 }
 0xac1   : > { %v1759_v44 = vpop.f32.mrb[48].mxu1  ;;  %v1807_v4 = vpop.f32.mrb[48].mxu0 }
 0xac2   : > { %v1760_v0 = vadd.f32 %v2344_v18, %v1759_v44  ;;  %v1761_v1 = vpop.f32.mrb[49].mxu1  ;;  %v1809_v6 = vpop.f32.mrb[49].mxu0 }
 0xac3   : > { %v1762_v2 = vpop.f32.mrb[50].mxu1  ;;  %v1810_v3 = vpop.f32.mrb[50].mxu0 }
 0xac4   : > { %v1808_v7 = vadd.f32 %v1807_v4, %v1760_v0  ;;  %v1763_v9 = vadd.f32 %v2344_v18, %v1762_v2  ;;  %v1764_v10 = vpop.f32.mrb[51].mxu1  ;;  %v1812_v11 = vpop.f32.mrb[51].mxu0 }
 0xac6   : > { %v1811_v12 = vadd.f32 %v1810_v3, %v1763_v9 }
 0xac9   : > { %v1767_v19 = vpop.f32.mrb[52].mxu1  ;;  %v1815_v13 = vpop.f32.mrb[52].mxu0 }
 0xaca   : > { %v1768_v14 = vadd.f32 %v2344_v18, %v1767_v19  ;;  %v1769_v15 = vpop.f32.mrb[53].mxu1  ;;  %v1817_v16 = vpop.f32.mrb[53].mxu0 }
 0xacb   : > { %v1770_v17 = vpop.f32.mrb[54].mxu1  ;;  %v1818_v22 = vpop.f32.mrb[54].mxu0 }
 0xacc   : > { %v1816_v24 = vadd.f32 %v1815_v13, %v1768_v14  ;;  %v1771_v29 = vpop.f32.mrb[55].mxu1  ;;  %v1819_v30 = vpop.f32.mrb[55].mxu0 }
 0xad1   : > { %v1855_v32 = vpop.f32.mrb[56].mxu1  ;;  %v1903_v33 = vpop.f32.mrb[56].mxu0 }
 0xad2   : > { %v1856_v34 = vadd.f32 %v1855_v32, %v1808_v7  ;;  %v1857_v35 = vpop.f32.mrb[57].mxu1  ;;  %v1905_v60 = vpop.f32.mrb[57].mxu0 }
 0xad3   : > { %v1858_v37 = vpop.f32.mrb[58].mxu1  ;;  %v1906_v23 = vpop.f32.mrb[58].mxu0 }
 0xad4   : > { %v1904_v38 = vadd.f32 %v1903_v33, %v1856_v34  ;;  %v1859_v25 = vadd.f32 %v1858_v37, %v1811_v12  ;;  %v1860_v41 = vpop.f32.mrb[59].mxu1  ;;  %v1908_v42 = vpop.f32.mrb[59].mxu0 }
 0xad6   : > { %v1907_v27 = vadd.f32 %v1906_v23, %v1859_v25 }
 0xad9   : > { %v1863_v43 = vpop.f32.mrb[60].mxu1  ;;  %v1911_v45 = vpop.f32.mrb[60].mxu0 }
 0xada   : > { %v1864_v46 = vadd.f32 %v1863_v43, %v1816_v24  ;;  %v1865_v47 = vpop.f32.mrb[61].mxu1  ;;  %v1913_v5 = vpop.f32.mrb[61].mxu0 }
 0xadb   : > { %v1866_v31 = vpop.f32.mrb[62].mxu1  ;;  %v1914_v48 = vpop.f32.mrb[62].mxu0 }
 0xadc   : > { %v1912_v8 = vadd.f32 %v1911_v45, %v1864_v46  ;;  %v1867_v49 = vpop.f32.mrb[63].mxu1  ;;  %v1915_v50 = vpop.f32.mrb[63].mxu0 }
 0xae1   : > { %v1951_v36 = vpop.f32.mrb[64].mxu1  ;;  %v1999_v53 = vpop.f32.mrb[64].mxu0 }
 0xae2   : > { %v1952_v54 = vadd.f32 %v1951_v36, %v1904_v38  ;;  %v1953_v55 = vpop.f32.mrb[65].mxu1  ;;  %v2001_v56 = vpop.f32.mrb[65].mxu0 }
 0xae3   : > { %v1954_v51 = vpop.f32.mrb[66].mxu1  ;;  %v2002_v57 = vpop.f32.mrb[66].mxu0 }
 0xae4   : > { %v2000_v58 = vadd.f32 %v1999_v53, %v1952_v54  ;;  %v1955_v52 = vadd.f32 %v1954_v51, %v1907_v27  ;;  %v1956_v59 = vpop.f32.mrb[67].mxu1  ;;  %v2004_v61 = vpop.f32.mrb[67].mxu0 }
 0xae6   : > { %v2003_v39 = vadd.f32 %v2002_v57, %v1955_v52 }
 0xae9   : > { %v1959_v62 = vpop.f32.mrb[68].mxu1  ;;  %v2007_v63 = vpop.f32.mrb[68].mxu0 }
 0xaea   : > { %v1960_v40 = vadd.f32 %v1959_v62, %v1912_v8  ;;  %v1961_v20 = vpop.f32.mrb[69].mxu1  ;;  %v2009_v18 = vpop.f32.mrb[69].mxu0 }
 0xaeb   : > { %v1962_v44 = vpop.f32.mrb[70].mxu1  ;;  %v2010_v4 = vpop.f32.mrb[70].mxu0 }
 0xaec   : > { %v2008_v0 = vadd.f32 %v2007_v63, %v1960_v40  ;;  %v1963_v1 = vpop.f32.mrb[71].mxu1  ;;  %v2011_v6 = vpop.f32.mrb[71].mxu0  ;;  %v2362_v40 = vld [vmem:[%s2714_s7 + $0x6] ss:$0 sm:$0xff] }
 0xaf1   : > { %v2047_v2 = vpop.f32.mrb[72].mxu1  ;;  %v2095_v3 = vpop.f32.mrb[72].mxu0 }
 0xaf2   : > { %v2048_v7 = vadd.f32 %v2047_v2, %v2000_v58  ;;  %v2049_v9 = vpop.f32.mrb[73].mxu1  ;;  %v2097_v10 = vpop.f32.mrb[73].mxu0 }
 0xaf3   : > { %v2050_v11 = vpop.f32.mrb[74].mxu1  ;;  %v2098_v12 = vpop.f32.mrb[74].mxu0 }
 0xaf4   : > { %v2096_v19 = vadd.f32 %v2095_v3, %v2048_v7  ;;  %v2051_v13 = vadd.f32 %v2050_v11, %v2003_v39  ;;  %v2052_v14 = vpop.f32.mrb[75].mxu1  ;;  %v2100_v15 = vpop.f32.mrb[75].mxu0  ;;  %v2361_v39 = vld [vmem:[%s2714_s7 + $0x5] ss:$0 sm:$0xff] }
 0xaf6   : > { %v2099_v16 = vadd.f32 %v2098_v12, %v2051_v13  ;;  %v2109_v17 = vadd.f32 %v2096_v19, %v2899_v26 }
 0xaf8   : > { %v2112_v22 = vsel %vm348_vm2, %v2109_v17, 0.0  ;;  %v2110_v24 = vadd.f32 %v2099_v16, %v2901_v28 }
 0xaf9   : > { %v2055_v29 = vpop.f32.mrb[76].mxu1  ;;  %v2103_v30 = vpop.f32.mrb[76].mxu0  ;;  %2113 = vadd.xlane.f32.xlu0 %v2112_v22 }
 0xafa   : > { %v2056_v32 = vadd.f32 %v2055_v29, %v2008_v0  ;;  %v2057_v33 = vpop.f32.mrb[77].mxu1  ;;  %v2105_v34 = vpop.f32.mrb[77].mxu0  ;;  %v2115_v35 = vsel %vm348_vm2, %v2110_v24, 0.0 }
 0xafb   : > { %v2058_v60 = vpop.f32.mrb[78].mxu1  ;;  %v2106_v37 = vpop.f32.mrb[78].mxu0  ;;  %2116 = vadd.xlane.f32.xlu1 %v2115_v35 }
 0xafc   : > { %v2104_v23 = vadd.f32 %v2103_v30, %v2056_v32  ;;  %v2059_v38 = vpop.f32.mrb[79].mxu1  ;;  %v2107_v25 = vpop.f32.mrb[79].mxu0 }
 0xafe   : > { %v2111_v26 = vadd.f32 %v2104_v23, %v2913_v21 }
 0xb00   : > { %v2118_v41 = vsel %vm348_vm2, %v2111_v26, 0.0 }
 0xb01   : > { %2119 = vadd.xlane.f32.xlu0 %v2118_v41 }
 0xb86   : > { %v2114_v28 = vpop.xlane.xlu0 %2113 }
 0xb87   : > { %v2121_v42 = vmul.f32 0.125, %v2114_v28 }
 0xb88   : > { %v2117_v27 = vpop.xlane.xlu1 %2116 }
 0xb89   : > { %v2124_v43 = vsub.f32 %v2109_v17, %v2121_v42  ;;  %v2122_v45 = vmul.f32 0.125, %v2117_v27  ;;  %v2364_v17 = vld [vmem:[%s3079_s5] ss:$0 sm:$0xff] (!%p2363_p5) }
 0xb8b   : > { %v2125_v46 = vsub.f32 %v2110_v24, %v2122_v45  ;;  %v2127_v47 = vmul.f32 %v2124_v43, %v2124_v43  ;;  %v2365_v24 = vld [vmem:[%s3079_s5 + $0x1] ss:$0 sm:$0xff] (!%p2363_p5) }
 0xb8d   : > { %v2130_v5 = vsel %vm348_vm2, %v2127_v47, 0.0  ;;  %v2128_v31 = vmul.f32 %v2125_v46, %v2125_v46 }
 0xb8e   : > { %2131 = vadd.xlane.f32.xlu1 %v2130_v5  ;;  %v2120_v48 = vpop.xlane.xlu0 %2119 }
 0xb8f   : > { %v2123_v8 = vmul.f32 0.125, %v2120_v48  ;;  %v2133_v49 = vsel %vm348_vm2, %v2128_v31, 0.0 }
 0xb90   : > { %2134 = vadd.xlane.f32.xlu0 %v2133_v49 }
 0xb91   : > { %v2126_v21 = vsub.f32 %v2111_v26, %v2123_v8 }
 0xb93   : > { %v2129_v50 = vmul.f32 %v2126_v21, %v2126_v21 }
 0xb95   : > { %v2136_v36 = vsel %vm348_vm2, %v2129_v50, 0.0 }
 0xb96   : > { %2137 = vadd.xlane.f32.xlu1 %v2136_v36 }
 0xc1b   : > { %v2132_v53 = vpop.xlane.xlu1 %2131 }
 0xc1c   : > { %v2139_v54 = vmul.f32 0.125, %v2132_v53 }
 0xc1d   : > { %v2135_v55 = vpop.xlane.xlu0 %2134 }
 0xc1e   : > { %v2142_v56 = vadd.f32 1e-05, %v2139_v54  ;;  %v2140_v51 = vmul.f32 0.125, %v2135_v55 }
 0xc20   : > { %2602 = vrsqrt.f32 %v2142_v56  ;;  %v2143_v57 = vadd.f32 1e-05, %v2140_v51 }
 0xc22   : > { %2604 = vrsqrt.f32 %v2143_v57 }
 0xc23   : > { %v2138_v58 = vpop.xlane.xlu1 %2137 }
 0xc24   : > { %v2141_v52 = vmul.f32 0.125, %v2138_v58 }
 0xc26   : > { %v2144_v59 = vadd.f32 1e-05, %v2141_v52 }
 0xc28   : > { %2606 = vrsqrt.f32 %v2144_v59 }
 0xc2a   : > { %v2603_v61 = vpop.eup %2602 }
 0xc2b   : > { %v2148_v62 = vmul.f32 %v2603_v61, %v2124_v43 }
 0xc2c   : > { %v2605_v63 = vpop.eup %2604 }
 0xc2d   : > { %v2155_v20 = vmul.f32 %v2361_v39, %v2148_v62  ;;  %v2149_v18 = vmul.f32 %v2605_v63, %v2125_v46 }
 0xc2f   : > { %v2162_v44 = vadd.f32 %v2362_v40, %v2155_v20  ;;  %v2156_v4 = vmul.f32 %v2361_v39, %v2149_v18 }
 0xc31   : > { %2165 = vst.msk [vmem:[#allocation2] sm:$0xff] %vm348_vm2, %v2162_v44  ;;  %v2163_v0 = vadd.f32 %v2362_v40, %v2156_v4  ;;  %v2175_v7 = vsel (!%p2363_p5), %vm2174_vm7, %v2162_v44, 0.0 }
 0xc32   : > { %v2607_v1 = vpop.eup %2606  ;;  %2176 = vadd.xlane.f32.xlu0 (!%p2363_p5), %v2175_v7 }
 0xc33   : > { %2166 = vst.msk [vmem:[#allocation2 + $0x8] sm:$0xff] %vm348_vm2, %v2163_v0  ;;  %v2150_v6 = vmul.f32 %v2607_v1, %v2126_v21  ;;  %2171 = sbr.rel (%p2363_p5) target bundleno = 3435 (0xd6b), region = 52 }
 0xc35   : > { %v2157_v2 = vmul.f32 %v2361_v39, %v2150_v6 }
 0xc37   : > { %v2164_v3 = vadd.f32 %v2362_v40, %v2157_v2 }
 0xc39   : > { %2167 = vst.msk [vmem:[#allocation2 + $0x10] sm:$0xff] %vm348_vm2, %v2164_v3 }
 0xcbf   : > { %v2177_v9 = vpop.xlane.xlu0 %2176 }
 0xcc0   : > { %v2178_v10 = vmul.f32 0.125, %v2177_v9 }
 0xcc2   : > { %v2179_v11 = vsub.f32 %v2162_v44, %v2178_v10 }
 0xcc4   : > { %v2180_v12 = vmul.f32 %v2179_v11, %v2179_v11 }
 0xcc6   : > { %v2181_v19 = vsel %vm2174_vm7, %v2180_v12, 0.0 }
 0xcc7   : > { %2182 = vadd.xlane.f32.xlu0 %v2181_v19 }
 0xd54   : > { %v2183_v13 = vpop.xlane.xlu0 %2182 }
 0xd55   : > { %v2184_v14 = vmul.f32 0.125, %v2183_v13 }
 0xd57   : > { %v2185_v15 = vadd.f32 1e-05, %v2184_v14 }
 0xd59   : > { %2608 = vrsqrt.f32 %v2185_v15 }
 0xd63   : > { %v2609_v16 = vpop.eup %2608 }
 0xd64   : > { %v2187_v22 = vmul.f32 %v2609_v16, %v2179_v11 }
 0xd66   : > { %v2192_v29 = vmul.f32 %v2364_v17, %v2187_v22 }
 0xd68   : > { %v2197_v30 = vadd.f32 %v2365_v24, %v2192_v29 }
 0xd6a   : > { %2198 = vst.msk [vmem:[#allocation3] sm:$0xf] %vm2174_vm7, %v2197_v30 }
 0xd6b PF: > { %p2494_p6 = scmp.eq.s32.totalorder %s2700_s22, 1  ;;  %s2658_s11 = smov [#allocation3]  }
 0xd6c   : > { %s2206_s12 = sshll.u32 %s2658_s11, 4  ;;  %s2207_s12 = int_to_ptr.vmem [resolvable:$true] %s2206_s12 }
 0xd6d   : > { %s2610_s13 = scalar_lea.vmem %s2207_s12, 64  ;;  %p2617_p10 = scmp.lt.s32.totalorder %s2207_s12, %s2207_s12 }
 0xd6e   : > { %p2611_p7 = scmp.ne.s32.totalorder %s2207_s12, %s2610_s13  ;;  %p2618_p11 = scmp.lt.s32.totalorder %s2610_s13, %s2610_s13 }
 0xd70   : > { %p2612_p8 = pnand %p2611_p7, %p2494_p6  ;;  %p2619_p12 = por %p2618_p11, %p2617_p10 }
 0xd72   : > { %p2613_p9 = pneg %p2612_p8 }
 0xd74   : > { %p2620_p13 = pnand %p2619_p12, %p2613_p9 }
 0xd76   : > { %2623 = shalt.err (!%p2620_p13)
}
 0xd77   : > { %s2624_s16 = scalar_lea.hbm %s3080_s6, 64 }
 0xd78   : > { %p2625_p0 = scmp.ne.s32.totalorder %s3080_s6, %s2624_s16  ;;  %p2630_p3 = scmp.lt.u32.totalorder %s2624_s16, %s3080_s6 }
 0xd7a   : > { %p2626_p1 = pnand %p2625_p0, %p2494_p6 }
 0xd7c   : > { %p2627_p2 = pneg %p2626_p1 }
 0xd7e   : > { %p2632_p4 = pnand %p2630_p3, %p2627_p2 }
 0xd80   : > { %2635 = shalt.err (!%p2632_p4)
}
 0xd81   : > { %2491 = dma.vmem_to_hbm [thread:$0]  (%p2494_p6), %s2207_s12, 64, %s3080_s6, [#allocation4]  }
 0xd82   : > { %2641 = dma.done.wait (%p2494_p6), [#allocation4], 64  }
 0xd83   : > { %2643 = vsyncadd (%p2494_p6), [#allocation4], 4294967232 }
 0xd84 PF: > { %s17_s21 = sadd.s32 1, %s2646_s21  }
 0xd85   : > { %p14_p5 = scmp.ge.s32.totalorder %s17_s21, 4  }
 0xd87   :  { %16 = sbr.rel (!%p14_p5) target bundleno = 1 (0x1), region = 85 }
 0xd8e   :  { %2219 = vsyncpa [#allocation4], 1 }
 0xd8f   :  { %2221 = vsyncpa [#allocation4 + $0x1], 1 }

</bundles_post_ra>
